<compile_context>
chip_gen: v5e
topology: v5e:2x2
jax: 0.10.0
libtpu: 0.0.40
codegen_flags: <defaults>
</compile_context>

<pallas_src>
import functools

import jax
import jax.numpy as jnp
from jax.experimental import pallas as pl
from jax.experimental.pallas import tpu as pltpu


# ------------------------------ fused kernel -------------------------------

def _simplenet_fused_kernel(xp_ref, convw_ref, convb_ref,
                            headw_ref, headb_ref, clsw_ref, clsb_ref,
                            out_ref, *, h, w, c):
    """One batch-block end-to-end.

    xp_ref   : (B, H+2, W+2, C)  bf16  spatially pre-padded NHWC images
    convw_ref: (9*C, Cout)       bf16  im2col conv weight, row = (ki*3+kj)*C + cin
    convb_ref: (1, Cout)         f32
    headw_ref: (Cout, Hid)       bf16  head weight with 1/(H*W) GAP scale folded in
    headb_ref: (1, Hid)          f32
    clsw_ref : (Hid, 128)        bf16  zero-padded past num_classes
    clsb_ref : (1, 128)          f32   zero-padded past num_classes
    out_ref  : (B, 128)          f32   lane-dense logits
    """
    bsz = xp_ref.shape[0]
    hw = h * w
    cout = convw_ref.shape[1]

    xv = xp_ref[...]                                      # (B, H+2, W+2, C) bf16

    # --- im2col: 9 static window slices, lane-concat, ONE collapse reshape ---
    taps = [xv[:, ki:ki + h, kj:kj + w, :]                # (B, H, W, C) each
            for ki in range(3) for kj in range(3)]
    patches = jnp.concatenate(taps, axis=-1)              # (B, H, W, 9*C)
    patches = patches.reshape(bsz * hw, 9 * c)            # major-dim collapse only

    # --- conv3x3 "same" as ONE bf16 MXU dot with f32 accumulation ---
    conv = jnp.dot(patches, convw_ref[...],
                   preferred_element_type=jnp.float32)    # (B*H*W, Cout) f32
    conv = jnp.maximum(conv + convb_ref[...], 0.0)        # bias + ReLU

    # --- global average pool as a sum (1/(H*W) folded into head_w) ---
    f = jnp.sum(conv.reshape(bsz, hw, cout), axis=1)      # (B, Cout) f32

    # --- head: Linear + ReLU ---
    hf = jnp.dot(f.astype(jnp.bfloat16), headw_ref[...],
                 preferred_element_type=jnp.float32) + headb_ref[...]
    hf = jnp.maximum(hf, 0.0)                             # (B, Hid) f32

    # --- classifier: Linear (lane-padded to 128) -> lane-dense store ---
    out_ref[...] = jnp.dot(hf.astype(jnp.bfloat16), clsw_ref[...],
                           preferred_element_type=jnp.float32) + clsb_ref[...]


# ------------------------------ forward wrapper ----------------------------

def simplenet_forward(x_nchw, params, *, num_classes=10, block_batch=None):
    """Equivalent to SimpleNet.forward(x) -> logits (return_feature=False)."""
    N, C, H, W = x_nchw.shape
    Hp, Wp = H + 2, W + 2
    hw = H * W

    # NCHW -> NHWC, cast to bf16 in the wrapper (halves the input DMA), 'same' pad.
    x = jnp.transpose(x_nchw, (0, 2, 3, 1)).astype(jnp.bfloat16)
    xpad = jnp.pad(x, ((0, 0), (1, 1), (1, 1), (0, 0)))   # (N, Hp, Wp, C)

    # Batch-block sizing: per-image VMEM footprint is ~60 KiB, so put as many
    # images as possible in one grid step (amortizes the ~0.35 us/step cost and
    # feeds the MXU a real M dimension).  Cap at 256 (multiple of 8 sublanes)
    # so large batches tile cleanly and stay well below even v7x's 64 MiB VMEM.
    if block_batch is None:
        block_batch = N if N <= 256 else 256
    n_pad = pl.cdiv(N, block_batch) * block_batch
    if n_pad != N:
        xpad = jnp.pad(xpad, ((0, n_pad - N), (0, 0), (0, 0), (0, 0)))

    cout = params["conv_w"].shape[1]
    hidden = params["head_w"].shape[1]
    ncls_pad = params["cls_w"].shape[1]                   # 128

    # Fold the global-average-pool 1/(H*W) scale into the head weight.
    head_w = (params["head_w"].astype(jnp.float32) * (1.0 / hw)).astype(jnp.bfloat16)

    kernel = functools.partial(_simplenet_fused_kernel, h=H, w=W, c=C)

    out = pl.pallas_call(
        kernel,
        out_shape=jax.ShapeDtypeStruct((n_pad, ncls_pad), jnp.float32),
        grid=(n_pad // block_batch,),
        in_specs=[
            # one batch-block of padded images per grid step
            pl.BlockSpec((block_batch, Hp, Wp, C), lambda i: (i, 0, 0, 0)),
            # weights / biases: full, constant blocks (DMA'd once, reused)
            pl.BlockSpec((9 * C, cout), lambda i: (0, 0)),
            pl.BlockSpec((1, cout), lambda i: (0, 0)),
            pl.BlockSpec((cout, hidden), lambda i: (0, 0)),
            pl.BlockSpec((1, hidden), lambda i: (0, 0)),
            pl.BlockSpec((hidden, ncls_pad), lambda i: (0, 0)),
            pl.BlockSpec((1, ncls_pad), lambda i: (0, 0)),
        ],
        out_specs=pl.BlockSpec((block_batch, ncls_pad), lambda i: (i, 0)),
        compiler_params=pltpu.CompilerParams(
            # batch-block axis is independent -> shard across TCs where present
            dimension_semantics=("parallel",),
            # explicit scoped-VMEM budget (v5e default is only 16 MiB)
            vmem_limit_bytes=32 * 1024 * 1024,
        ),
    )(xpad, params["conv_w"], params["conv_b"],
      head_w, params["head_b"],
      params["cls_w"], params["cls_b"])

    return out[:N, :num_classes]                          # (N, num_classes)


# ------------------------------ parameters ---------------------------------

def init_params(key, c_in=4, c_backbone=32, hidden=32, num_classes=10,
                lane_pad=128):
    k1, k2, k3, k4, k5, k6 = jax.random.split(key, 6)

    # Conv: PyTorch layout (Cout, Cin, 3, 3) -> im2col (9*Cin, Cout) with row
    # order (ki*3 + kj)*Cin + cin, matching the kernel's tap concatenation.
    conv_w_pt = 0.1 * jax.random.normal(k1, (c_backbone, c_in, 3, 3), jnp.float32)
    conv_w = jnp.transpose(conv_w_pt, (2, 3, 1, 0)).reshape(9 * c_in, c_backbone)
    conv_w = conv_w.astype(jnp.bfloat16)
    conv_b = 0.1 * jax.random.normal(k2, (1, c_backbone), jnp.float32)

    # PyTorch Linear is (out, in); store transposed for x @ W^T.
    head_w_pt = 0.1 * jax.random.normal(k3, (hidden, c_backbone), jnp.float32)
    head_w = head_w_pt.T.astype(jnp.bfloat16)
    head_b = 0.1 * jax.random.normal(k4, (1, hidden), jnp.float32)

    # Classifier zero-padded to 128 lanes so the kernel's store is lane-dense;
    # extra columns are exact zeros and sliced off in JAX.
    cls_w_pt = 0.1 * jax.random.normal(k5, (num_classes, hidden), jnp.float32)
    cls_w = jnp.zeros((hidden, lane_pad), jnp.float32)
    cls_w = cls_w.at[:, :num_classes].set(cls_w_pt.T).astype(jnp.bfloat16)
    cls_b_raw = 0.1 * jax.random.normal(k6, (1, num_classes), jnp.float32)
    cls_b = jnp.zeros((1, lane_pad), jnp.float32).at[:, :num_classes].set(cls_b_raw)

    return dict(conv_w=conv_w, conv_b=conv_b,
                head_w=head_w, head_b=head_b,
                cls_w=cls_w, cls_b=cls_b)


# ------------------------------ pure-JAX reference -------------------------

def simplenet_reference(x_nchw, params, *, num_classes=10):
    N, C, H, W = x_nchw.shape
    x = jnp.transpose(x_nchw, (0, 2, 3, 1)).astype(jnp.bfloat16).astype(jnp.float32)
    xpad = jnp.pad(x, ((0, 0), (1, 1), (1, 1), (0, 0)))
    taps = [xpad[:, ki:ki + H, kj:kj + W, :].reshape(N, H * W, C)
            for ki in range(3) for kj in range(3)]
    patches = jnp.concatenate(taps, axis=-1)                        # (N, HW, 9C)
    conv = jnp.einsum("npk,kc->npc", patches,
                      params["conv_w"].astype(jnp.float32))
    conv = jnp.maximum(conv + params["conv_b"][None], 0.0)
    f = jnp.mean(conv, axis=1)                                      # (N, Cout)
    h = jnp.maximum(f @ params["head_w"].astype(jnp.float32) + params["head_b"], 0.0)
    y = h @ params["cls_w"].astype(jnp.float32) + params["cls_b"]
    return y[:, :num_classes]


if __name__ == "__main__":
    key = jax.random.PRNGKey(0)
    kx, kp = jax.random.split(key)

    # Small shapes: batch=2, channels=4, spatial=16x16, num_classes=10.
    x = jax.random.normal(kx, (2, 4, 16, 16), jnp.float32)   # NCHW input
    params = init_params(kp)

    y = jax.jit(simplenet_forward)(x, params)
    jax.block_until_ready(y)
    assert y.shape == (2, 10), y.shape

    y_ref = simplenet_reference(x, params)
    max_err = float(jnp.max(jnp.abs(y - y_ref)))
    assert max_err < 5e-2, f"max abs error vs reference: {max_err}"

    print("KERNEL_OK")
</pallas_src>

<mosaic_0001>
module attributes {stable_mosaic.version = 11 : i64} {
  func.func @_simplenet_fused_kernel(%arg0: i32, %arg1: memref<2x18x18x4xbf16, #tpu.memory_space<vmem>>, %arg2: memref<36x32xbf16, #tpu.memory_space<vmem>>, %arg3: memref<1x32xf32, #tpu.memory_space<vmem>>, %arg4: memref<32x32xbf16, #tpu.memory_space<vmem>>, %arg5: memref<1x32xf32, #tpu.memory_space<vmem>>, %arg6: memref<32x128xbf16, #tpu.memory_space<vmem>>, %arg7: memref<1x128xf32, #tpu.memory_space<vmem>>, %arg8: memref<2x128xf32, #tpu.memory_space<vmem>>) attributes {dimension_semantics = [#tpu.dimension_semantics<parallel>], iteration_bounds = array<i64: 1>, scalar_prefetch = 0 : i64, scratch_operands = 0 : i64, tpu.core_type = #tpu.core_type<tc>, window_params = [{transform_indices = @transform_0, window_bounds = array<i64: 2, 18, 18, 4>}, {pipeline_mode = #tpu.pipeline_mode<synchronous>, transform_indices = @transform_1, window_bounds = array<i64: 36, 32>}, {pipeline_mode = #tpu.pipeline_mode<synchronous>, transform_indices = @transform_2, window_bounds = array<i64: 1, 32>}, {pipeline_mode = #tpu.pipeline_mode<synchronous>, transform_indices = @transform_3, window_bounds = array<i64: 32, 32>}, {pipeline_mode = #tpu.pipeline_mode<synchronous>, transform_indices = @transform_4, window_bounds = array<i64: 1, 32>}, {pipeline_mode = #tpu.pipeline_mode<synchronous>, transform_indices = @transform_5, window_bounds = array<i64: 32, 128>}, {pipeline_mode = #tpu.pipeline_mode<synchronous>, transform_indices = @transform_6, window_bounds = array<i64: 1, 128>}, {transform_indices = @transform_7, window_bounds = array<i64: 2, 128>}]} {
    %c0 = arith.constant 0 : index
    %c0_0 = arith.constant 0 : index
    %c0_1 = arith.constant 0 : index
    %c0_2 = arith.constant 0 : index
    %0 = vector.load %arg1[%c0, %c0_0, %c0_1, %c0_2] : memref<2x18x18x4xbf16, #tpu.memory_space<vmem>>, vector<2x18x18x4xbf16>
    %1 = vector.extract_strided_slice %0 {offsets = [0, 0, 0, 0], sizes = [2, 16, 16, 4], strides = [1, 1, 1, 1]} : vector<2x18x18x4xbf16> to vector<2x16x16x4xbf16>
    %2 = vector.extract_strided_slice %0 {offsets = [0, 0, 1, 0], sizes = [2, 16, 16, 4], strides = [1, 1, 1, 1]} : vector<2x18x18x4xbf16> to vector<2x16x16x4xbf16>
    %3 = vector.extract_strided_slice %0 {offsets = [0, 0, 2, 0], sizes = [2, 16, 16, 4], strides = [1, 1, 1, 1]} : vector<2x18x18x4xbf16> to vector<2x16x16x4xbf16>
    %4 = vector.extract_strided_slice %0 {offsets = [0, 1, 0, 0], sizes = [2, 16, 16, 4], strides = [1, 1, 1, 1]} : vector<2x18x18x4xbf16> to vector<2x16x16x4xbf16>
    %5 = vector.extract_strided_slice %0 {offsets = [0, 1, 1, 0], sizes = [2, 16, 16, 4], strides = [1, 1, 1, 1]} : vector<2x18x18x4xbf16> to vector<2x16x16x4xbf16>
    %6 = vector.extract_strided_slice %0 {offsets = [0, 1, 2, 0], sizes = [2, 16, 16, 4], strides = [1, 1, 1, 1]} : vector<2x18x18x4xbf16> to vector<2x16x16x4xbf16>
    %7 = vector.extract_strided_slice %0 {offsets = [0, 2, 0, 0], sizes = [2, 16, 16, 4], strides = [1, 1, 1, 1]} : vector<2x18x18x4xbf16> to vector<2x16x16x4xbf16>
    %8 = vector.extract_strided_slice %0 {offsets = [0, 2, 1, 0], sizes = [2, 16, 16, 4], strides = [1, 1, 1, 1]} : vector<2x18x18x4xbf16> to vector<2x16x16x4xbf16>
    %9 = vector.extract_strided_slice %0 {offsets = [0, 2, 2, 0], sizes = [2, 16, 16, 4], strides = [1, 1, 1, 1]} : vector<2x18x18x4xbf16> to vector<2x16x16x4xbf16>
    %10 = tpu.concatenate %1, %2, %3, %4, %5, %6, %7, %8, %9 in 3 : vector<2x16x16x4xbf16>, vector<2x16x16x4xbf16>, vector<2x16x16x4xbf16>, vector<2x16x16x4xbf16>, vector<2x16x16x4xbf16>, vector<2x16x16x4xbf16>, vector<2x16x16x4xbf16>, vector<2x16x16x4xbf16>, vector<2x16x16x4xbf16> -> vector<2x16x16x36xbf16>
    %11 = vector.shape_cast %10 : vector<2x16x16x36xbf16> to vector<512x36xbf16>
    %c0_3 = arith.constant 0 : index
    %c0_4 = arith.constant 0 : index
    %12 = vector.load %arg2[%c0_3, %c0_4] : memref<36x32xbf16, #tpu.memory_space<vmem>>, vector<36x32xbf16>
    %cst = arith.constant dense<0.000000e+00> : vector<512x32xf32>
    %13 = tpu.matmul %11, %12, %cst {dimension_numbers = #tpu.dot_dimension_numbers<[1], [0], [0], [1], [0, 0, 1, 1], [], []>} : vector<512x36xbf16>, vector<36x32xbf16>, vector<512x32xf32> -> vector<512x32xf32>
    %c0_5 = arith.constant 0 : index
    %c0_6 = arith.constant 0 : index
    %14 = vector.load %arg3[%c0_5, %c0_6] : memref<1x32xf32, #tpu.memory_space<vmem>>, vector<1x32xf32>
    %15 = vector.broadcast %14 : vector<1x32xf32> to vector<512x32xf32>
    %16 = arith.addf %13, %15 : vector<512x32xf32>
    %cst_7 = arith.constant 0.000000e+00 : f32
    %17 = vector.broadcast %cst_7 : f32 to vector<512x32xf32>
    %18 = arith.maximumf %16, %17 : vector<512x32xf32>
    %19 = vector.shape_cast %18 : vector<512x32xf32> to vector<2x256x32xf32>
    %cst_8 = arith.constant dense<0.000000e+00> : vector<2x32xf32>
    %20 = vector.multi_reduction <add>, %19, %cst_8 [1] : vector<2x256x32xf32> to vector<2x32xf32>
    %21 = arith.truncf %20 : vector<2x32xf32> to vector<2x32xbf16>
    %c0_9 = arith.constant 0 : index
    %c0_10 = arith.constant 0 : index
    %22 = vector.load %arg4[%c0_9, %c0_10] : memref<32x32xbf16, #tpu.memory_space<vmem>>, vector<32x32xbf16>
    %cst_11 = arith.constant dense<0.000000e+00> : vector<2x32xf32>
    %23 = tpu.matmul %21, %22, %cst_11 {dimension_numbers = #tpu.dot_dimension_numbers<[1], [0], [0], [1], [0, 0, 1, 1], [], []>} : vector<2x32xbf16>, vector<32x32xbf16>, vector<2x32xf32> -> vector<2x32xf32>
    %c0_12 = arith.constant 0 : index
    %c0_13 = arith.constant 0 : index
    %24 = vector.load %arg5[%c0_12, %c0_13] : memref<1x32xf32, #tpu.memory_space<vmem>>, vector<1x32xf32>
    %25 = vector.broadcast %24 : vector<1x32xf32> to vector<2x32xf32>
    %26 = arith.addf %23, %25 : vector<2x32xf32>
    %cst_14 = arith.constant 0.000000e+00 : f32
    %27 = vector.broadcast %cst_14 : f32 to vector<2x32xf32>
    %28 = arith.maximumf %26, %27 : vector<2x32xf32>
    %29 = arith.truncf %28 : vector<2x32xf32> to vector<2x32xbf16>
    %c0_15 = arith.constant 0 : index
    %c0_16 = arith.constant 0 : index
    %30 = vector.load %arg6[%c0_15, %c0_16] : memref<32x128xbf16, #tpu.memory_space<vmem>>, vector<32x128xbf16>
    %cst_17 = arith.constant dense<0.000000e+00> : vector<2x128xf32>
    %31 = tpu.matmul %29, %30, %cst_17 {dimension_numbers = #tpu.dot_dimension_numbers<[1], [0], [0], [1], [0, 0, 1, 1], [], []>} : vector<2x32xbf16>, vector<32x128xbf16>, vector<2x128xf32> -> vector<2x128xf32>
    %c0_18 = arith.constant 0 : index
    %c0_19 = arith.constant 0 : index
    %32 = vector.load %arg7[%c0_18, %c0_19] : memref<1x128xf32, #tpu.memory_space<vmem>>, vector<1x128xf32>
    %33 = vector.broadcast %32 : vector<1x128xf32> to vector<2x128xf32>
    %34 = arith.addf %31, %33 : vector<2x128xf32>
    %c0_20 = arith.constant 0 : index
    %c0_21 = arith.constant 0 : index
    %35 = vector.load %arg8[%c0_20, %c0_21] : memref<2x128xf32, #tpu.memory_space<vmem>>, vector<2x128xf32>
    tpu.vector_store %arg8[%c0_20, %c0_21], %34 {strides = array<i32>} : memref<2x128xf32, #tpu.memory_space<vmem>>, vector<2x128xf32>,
    return
  }
  func.func @transform_0(%arg0: i32) -> (i32, i32, i32, i32) {
    %c0_i32 = arith.constant 0 : i32
    %c0_i32_0 = arith.constant 0 : i32
    %c0_i32_1 = arith.constant 0 : i32
    %c0_i32_2 = arith.constant 0 : i32
    return %arg0, %c0_i32, %c0_i32_0, %c0_i32_1 : i32, i32, i32, i32
  }
  func.func @transform_1(%arg0: i32) -> (i32, i32) {
    %c0_i32 = arith.constant 0 : i32
    %c0_i32_0 = arith.constant 0 : i32
    %c0_i32_1 = arith.constant 0 : i32
    return %c0_i32, %c0_i32_0 : i32, i32
  }
  func.func @transform_2(%arg0: i32) -> (i32, i32) {
    %c0_i32 = arith.constant 0 : i32
    %c0_i32_0 = arith.constant 0 : i32
    %c0_i32_1 = arith.constant 0 : i32
    return %c0_i32, %c0_i32_0 : i32, i32
  }
  func.func @transform_3(%arg0: i32) -> (i32, i32) {
    %c0_i32 = arith.constant 0 : i32
    %c0_i32_0 = arith.constant 0 : i32
    %c0_i32_1 = arith.constant 0 : i32
    return %c0_i32, %c0_i32_0 : i32, i32
  }
  func.func @transform_4(%arg0: i32) -> (i32, i32) {
    %c0_i32 = arith.constant 0 : i32
    %c0_i32_0 = arith.constant 0 : i32
    %c0_i32_1 = arith.constant 0 : i32
    return %c0_i32, %c0_i32_0 : i32, i32
  }
  func.func @transform_5(%arg0: i32) -> (i32, i32) {
    %c0_i32 = arith.constant 0 : i32
    %c0_i32_0 = arith.constant 0 : i32
    %c0_i32_1 = arith.constant 0 : i32
    return %c0_i32, %c0_i32_0 : i32, i32
  }
  func.func @transform_6(%arg0: i32) -> (i32, i32) {
    %c0_i32 = arith.constant 0 : i32
    %c0_i32_0 = arith.constant 0 : i32
    %c0_i32_1 = arith.constant 0 : i32
    return %c0_i32, %c0_i32_0 : i32, i32
  }
  func.func @transform_7(%arg0: i32) -> (i32, i32) {
    %c0_i32 = arith.constant 0 : i32
    %c0_i32_0 = arith.constant 0 : i32
    return %arg0, %c0_i32 : i32, i32
  }
}

</mosaic_0001>

<bundles_post_ra>
// kernel: simplenet_forward.1
= control target key start
LH: loop header
LB: loop body
LE: loop exit
PB: predicated region body
PF: predicated region fallthrough
CT: control target
= control target key end

     0   :  { %vm392_vm0 = vsmask.f32 7424  ;;  %s2887_s27 = smov 4   ;;  %s5059_s0 = inlined_call_operand.vmem [shape: bf16[2,18,18,4], index: 0, kind: input, shape index: {}]   ;;  %s5060_s1 = inlined_call_operand.vmem [shape: bf16[36,32], index: 1, kind: input, shape index: {}]   ;;  %s5061_s2 = inlined_call_operand.vmem [shape: f32[1,32], index: 2, kind: input, shape index: {}]   ;;  %s5062_s3 = inlined_call_operand.vmem [shape: bf16[32,32], index: 3, kind: input, shape index: {}]   ;;  %s5063_s4 = inlined_call_operand.vmem [shape: f32[1,32], index: 4, kind: input, shape index: {}]   ;;  %s5064_s5 = inlined_call_operand.vmem [shape: bf16[32,128], index: 5, kind: input, shape index: {}]   ;;  %s5065_s6 = inlined_call_operand.vmem [shape: f32[1,128], index: 6, kind: input, shape index: {}]   ;;  %s5066_s7 = inlined_call_operand.hbm [shape: f32[2,128], index: 7, kind: output, shape index: {}]  }
   0x1   :  { %v2939_v0 = vld [vmem:[%s5059_s0 + $0x30] sm:$0xff]  ;;  %v42_v1 = vld [vmem:[%s5059_s0 + $0x38] sm:$0x1]  ;;  %v36_v4 = vld [vmem:[%s5059_s0 + $0x20] sm:$0x1] }
   0x2   :  { %v332_v2 = vunpack.c.l.b16 %v42_v1  ;;  %v2947_v3 = vld [vmem:[%s5059_s0 + $0x18] sm:$0xff]  ;;  %v2955_v5 = vld [vmem:[%s5059_s0] sm:$0xff]  ;;  %v442_v6 = vshrl.u32 %v2939_v0, 16  ;;  %v444_v7 = vshll.u32 %v2939_v0, 16  ;;  %v330_v8 = vunpack.c.l.b16 %v36_v4  ;;  %v30_v9 = vld [vmem:[%s5059_s0 + $0x8] sm:$0x1] }
   0x3   :  { %v418_v11 = vshrl.u32 %v2947_v3, 16  ;;  %v420_v12 = vshll.u32 %v2947_v3, 16  ;;  %v328_v13 = vunpack.c.l.b16 %v30_v9  ;;  %v45_v14 = vld [vmem:[%s5059_s0 + $0x44] sm:$0x1]  ;;  %v394_v17 = vshrl.u32 %v2955_v5, 16  ;;  %v2976_v19 = vld [vmem:[%s5059_s0 + $0x3c] sm:$0xff] }
   0x4   :  { %v2962_v10 = vpack.c.b16 %v332_v2, %v332_v2  ;;  %v446_v15 = vrot.slane %v444_v7, 1  ;;  %v2969_v16 = vpack.c.b16 %v330_v8, %v330_v8  ;;  %v396_v18 = vshll.u32 %v2955_v5, 16  ;;  %v39_v24 = vld [vmem:[%s5059_s0 + $0x2c] sm:$0x1]  ;;  %v2989_v29 = vld [vmem:[%s5059_s0 + $0x24] sm:$0xff]  ;;  %v3032_v58 = vld [vmem:[%s5059_s0 + $0x54] sm:$0xff] }
   0x5   :  { %v422_v21 = vrot.slane %v420_v12, 1  ;;  %v2979_v22 = vpack.c.b16 %v328_v13, %v328_v13  ;;  %v333_v23 = vunpack.c.l.b16 %v45_v14  ;;  %v454_v28 = vshrl.u32 %v2976_v19, 16  ;;  %v2998_v38 = vld [vmem:[%s5059_s0 + $0xc] sm:$0xff]  ;;  %v33_v39 = vld [vmem:[%s5059_s0 + $0x14] sm:$0x1]  ;;  %v2772_v44 = vld [vmem:[%s5059_s0 + $0x60] sm:$0xff] }
   0x6   :  { %v449_v20 = vshll.u32 %v2962_v10, 16  ;;  %v447_v25 = vor.u32 %v446_v15, %v442_v6  ;;  %v425_v26 = vshll.u32 %v2969_v16, 16  ;;  %v398_v27 = vrot.slane %v396_v18, 1  ;;  %v54_v49 = vld [vmem:[%s5059_s0 + $0x68] sm:$0x1] }
   0x7   :  { %v423_v31 = vor.u32 %v422_v21, %v418_v11  ;;  %v401_v32 = vshll.u32 %v2979_v22, 16  ;;  %v2992_v33 = vpack.c.b16 %v333_v23, %v333_v23  ;;  %v456_v36 = vshll.u32 %v2976_v19, 16  ;;  %v51_v59 = vld [vmem:[%s5059_s0 + $0x5c] sm:$0x1]  ;;  %v3045_v7 = vld [vmem:[%s5059_s0 + $0x48] sm:$0xff] }
   0x8   :  { %v451_v30 = vrot.slane %v449_v20, 1  ;;  %v427_v34 = vrot.slane %v425_v26, 1  ;;  %v399_v35 = vor.u32 %v398_v27, %v394_v17  ;;  %v331_v37 = vunpack.c.l.b16 %v39_v24  ;;  %v48_v8 = vld [vmem:[%s5059_s0 + $0x50] sm:$0x1]  ;;  %v3056_v14 = vld [vmem:[%s5059_s0 + $0x84] sm:$0xff] }
   0x9   :  { %v403_v41 = vrot.slane %v401_v32, 1  ;;  %v461_v42 = vshll.u32 %v2992_v33, 16  ;;  %v430_v43 = vshrl.u32 %v2989_v29, 16  ;;  %v458_v46 = vrot.slane %v456_v36, 1  ;;  %v63_v21 = vld [vmem:[%s5059_s0 + $0x8c] sm:$0x1] }
   0xa   :  { %v3004_v40 = vsel %vm392_vm0, %v447_v25, %v451_v30  ;;  %v3014_v45 = vsel %vm392_vm0, %v423_v31, %v427_v34  ;;  %v3016_v47 = vpack.c.b16 %v331_v37, %v331_v37  ;;  %v432_v48 = vshll.u32 %v2989_v29, 16 }
   0xb   :  { %5139 = vst [vmem:[#allocation5_spill] sm:$0xff] %v3004_v40  ;;  %785 = vrot.lane.b32.xlu2 %v3004_v40, %s2887_s27  ;;  %781 = vrot.lane.b32.xlu1 %v3014_v45, %s2887_s27  ;;  %v404_v50 = vsel %vm392_vm0, %v399_v35, %v403_v41  ;;  %v463_v51 = vrot.slane %v461_v42, 1  ;;  %v329_v52 = vunpack.c.l.b16 %v33_v39  ;;  %v406_v53 = vshrl.u32 %v2998_v38, 16 }
   0xc   :  { %777 = vrot.lane.b32.xlu0 %v404_v50, %s2887_s27  ;;  %v459_v54 = vor.u32 %v458_v46, %v454_v28  ;;  %v434_v55 = vrot.slane %v432_v48, 1  ;;  %v437_v56 = vshll.u32 %v3016_v47, 16  ;;  %v408_v57 = vshll.u32 %v2998_v38, 16 }
   0xd   :  { %v3037_v60 = vpack.c.b16 %v329_v52, %v329_v52  ;;  %v336_v61 = vunpack.c.l.b16 %v54_v49  ;;  %v490_v62 = vshrl.u32 %v2772_v44, 16  ;;  %v492_v63 = vshll.u32 %v2772_v44, 16 }
   0xe   :  { %v3040_v1 = vsel %vm392_vm0, %v459_v54, %v463_v51  ;;  %v435_v2 = vor.u32 %v434_v55, %v430_v43  ;;  %v439_v4 = vrot.slane %v437_v56, 1  ;;  %v410_v6 = vrot.slane %v408_v57, 1 }
   0xf   :  { %5140 = vst [vmem:[#allocation6_spill] sm:$0xff] %v3040_v1  ;;  %v413_v9 = vshll.u32 %v3037_v60, 16  ;;  %v3051_v11 = vpack.c.b16 %v336_v61, %v336_v61  ;;  %v494_v12 = vrot.slane %v492_v63, 1  ;;  %v335_v13 = vunpack.c.l.b16 %v51_v59 }
  0x10   :  { %v3059_v15 = vsel %vm392_vm0, %v435_v2, %v439_v4  ;;  %v411_v17 = vor.u32 %v410_v6, %v406_v53  ;;  %v478_v18 = vshrl.u32 %v3032_v58, 16  ;;  %v480_v20 = vshll.u32 %v3032_v58, 16 }
  0x11   :  { %5141 = vst [vmem:[#allocation7_spill] sm:$0xff] %v3051_v11  ;;  %v415_v23 = vrot.slane %v413_v9, 1  ;;  %v495_v24 = vor.u32 %v494_v12, %v490_v62  ;;  %v497_v25 = vshll.u32 %v3051_v11, 16  ;;  %v3067_v26 = vpack.c.b16 %v335_v13, %v335_v13 }
  0x12   :  { %12 = vsyncpa [#allocation3], 0  ;;  %v482_v27 = vrot.slane %v480_v20, 1  ;;  %v334_v28 = vunpack.c.l.b16 %v48_v8  ;;  %v466_v30 = vshrl.u32 %v3045_v7, 16  ;;  %v468_v31 = vshll.u32 %v3045_v7, 16  ;;  %v3082_v37 = vld [vmem:[%s5059_s0 + $0x78] sm:$0xff] }
  0x13   :  { %787 = vrot.lane.b32.xlu2 %v3040_v1, %s2887_s27  ;;  %783 = vrot.lane.b32.xlu1 %v3059_v15, %s2887_s27  ;;  %v3076_v32 = vsel %vm392_vm0, %v411_v17, %v415_v23  ;;  %v499_v34 = vrot.slane %v497_v25, 1  ;;  %v485_v35 = vshll.u32 %v3067_v26, 16  ;;  %v339_v36 = vunpack.c.l.b16 %v63_v21  ;;  %v60_v39 = vld [vmem:[%s5059_s0 + $0x80] sm:$0x1]  ;;  %v3098_v50 = vld [vmem:[%s5059_s0 + $0x6c] sm:$0xff]  ;;  %s2888_s19 = smov 8  }
  0x14   :  { %779 = vrot.lane.b32.xlu0 %v3076_v32, %s2887_s27  ;;  %v483_v41 = vor.u32 %v482_v27, %v478_v18  ;;  %v3089_v42 = vpack.c.b16 %v334_v28, %v334_v28  ;;  %v470_v43 = vrot.slane %v468_v31, 1  ;;  %v526_v48 = vshrl.u32 %v3056_v14, 16  ;;  %v57_v51 = vld [vmem:[%s5059_s0 + $0x74] sm:$0x1]  ;;  %v72_v62 = vld [vmem:[%s5059_s0 + $0xb0] sm:$0x1] }
  0x15   :  { %v487_v44 = vrot.slane %v485_v35, 1  ;;  %v3091_v46 = vpack.c.b16 %v339_v36, %v339_v36  ;;  %v528_v49 = vshll.u32 %v3056_v14, 16  ;;  %v3104_v52 = vsel %vm392_vm0, %v495_v24, %v499_v34  ;;  %v3121_v8 = vld [vmem:[%s5059_s0 + $0xa8] sm:$0xff]  ;;  %v3128_v17 = vld [vmem:[%s5059_s0 + $0x9c] sm:$0xff]  ;;  %v69_v24 = vld [vmem:[%s5059_s0 + $0xa4] sm:$0x1] }
  0x16   :  { %5142 = vst [vmem:[#allocation8_spill] sm:$0xff] %v3104_v52  ;;  %v471_v53 = vor.u32 %v470_v43, %v466_v30  ;;  %v473_v54 = vshll.u32 %v3089_v42, 16  ;;  %v338_v55 = vunpack.c.l.b16 %v60_v39  ;;  %v514_v59 = vshrl.u32 %v3082_v37, 16  ;;  %v3152_v39 = vld [vmem:[%s5059_s0 + $0x90] sm:$0xff]  ;;  %s2890_s20 = smov 24   ;;  %s2891_s21 = smov 20  }
  0x17   :  { %v530_v56 = vrot.slane %v528_v49, 1  ;;  %v533_v57 = vshll.u32 %v3091_v46, 16  ;;  %v516_v61 = vshll.u32 %v3082_v37, 16  ;;  %v3114_v63 = vsel %vm392_vm0, %v483_v41, %v487_v44  ;;  %5144 = vst [vmem:[#allocation10_spill] sm:$0xff] %v3121_v8  ;;  %v66_v41 = vld [vmem:[%s5059_s0 + $0x98] sm:$0x1] }
  0x18   :  { %5143 = vst [vmem:[#allocation9_spill] sm:$0xff] %v3114_v63  ;;  %v475_v2 = vrot.slane %v473_v54, 1  ;;  %v3116_v4 = vpack.c.b16 %v338_v55, %v338_v55  ;;  %v337_v6 = vunpack.c.l.b16 %v57_v51  ;;  %v502_v12 = vshrl.u32 %v3098_v50, 16  ;;  %v3162_v51 = vld [vmem:[%s5059_s0 + $0xe4] sm:$0xff]  ;;  %v3264_v40 = vld [vmem:[%s5059_s0 + $0x12c] sm:$0xff]  ;;  %s2892_s22 = smov 16  }
  0x19   :  { %v518_v9 = vrot.slane %v516_v61, 1  ;;  %v504_v13 = vshll.u32 %v3098_v50, 16  ;;  %v342_v23 = vunpack.c.l.b16 %v72_v62  ;;  %v531_v25 = vor.u32 %v530_v56, %v526_v48  ;;  %5147 = vst [vmem:[#allocation13_spill] sm:$0xff] %v3162_v51  ;;  %s2893_s23 = smov 32   ;;  %s2894_s24 = smov 28  }
  0x1a   :  { %v3133_v18 = vsel %vm392_vm0, %v471_v53, %v475_v2  ;;  %v521_v20 = vshll.u32 %v3116_v4, 16  ;;  %v3136_v21 = vpack.c.b16 %v337_v6, %v337_v6  ;;  %v535_v27 = vrot.slane %v533_v57, 1  ;;  %v87_v57 = vld [vmem:[%s5059_s0 + $0xec] sm:$0x1]  ;;  %s2895_s10 = smov [#allocation2]   ;;  %s2553_s14 = sshll.u32 %s5066_s7, 4  ;;  %s2554_s14 = int_to_ptr.hbm [resolvable:$true] %s2553_s14 }
  0x1b   :  { %793 = vrot.lane.b32.xlu2 %v3104_v52, %s2887_s27  ;;  %5145 = vst [vmem:[#allocation11_spill] sm:$0xff] %v3133_v18  ;;  %791 = vrot.lane.b32.xlu1 %v3114_v63, %s2887_s27  ;;  %v519_v28 = vor.u32 %v518_v9, %v514_v59  ;;  %v506_v30 = vrot.slane %v504_v13, 1  ;;  %v3146_v35 = vpack.c.b16 %v342_v23, %v342_v23  ;;  %v564_v36 = vshll.u32 %v3121_v8, 16  ;;  %v84_v23 = vld [vmem:[%s5059_s0 + $0xe0] sm:$0x1]  ;;  %v3240_v63 = vld [vmem:[%s5059_s0 + $0xf0] sm:$0xff] }
  0x1c   :  { %789 = vrot.lane.b32.xlu0 %v3133_v18, %s2887_s27  ;;  %v523_v31 = vrot.slane %v521_v20, 1  ;;  %v509_v34 = vshll.u32 %v3136_v21, 16  ;;  %v562_v44 = vshrl.u32 %v3121_v8, 16  ;;  %v341_v48 = vunpack.c.l.b16 %v69_v24  ;;  %v2782_v20 = vld [vmem:[%s5059_s0 + $0xd8] sm:$0xff]  ;;  %5155 = vst [vmem:[#allocation21_spill] sm:$0xff] %v3240_v63  ;;  %s2551_s11 = sshll.u32 %s2895_s10, 4  ;;  %s2552_s11 = int_to_ptr.vmem [resolvable:$true] %s2551_s11 }
  0x1d   :  { %5146 = vst [vmem:[#allocation12_spill] sm:$0xff] %v3146_v35  ;;  %v507_v43 = vor.u32 %v506_v30, %v502_v12  ;;  %v552_v49 = vshll.u32 %v3128_v17, 16  ;;  %v566_v54 = vrot.slane %v564_v36, 1  ;;  %v569_v55 = vshll.u32 %v3146_v35, 16 }
  0x1e   :  { %v511_v53 = vrot.slane %v509_v34, 1  ;;  %v550_v56 = vshrl.u32 %v3128_v17, 16  ;;  %v3170_v59 = vsel %vm392_vm0, %v531_v25, %v535_v27  ;;  %v3172_v61 = vpack.c.b16 %v341_v48, %v341_v48 }
  0x1f   :  { %v554_v62 = vrot.slane %v552_v49, 1  ;;  %v340_v2 = vunpack.c.l.b16 %v66_v41  ;;  %v3175_v6 = vsel %vm392_vm0, %v519_v28, %v523_v31  ;;  %v538_v12 = vshrl.u32 %v3152_v39, 16  ;;  %v2779_v49 = vld [vmem:[%s5059_s0 + $0xb4] sm:$0xff] }
  0x20   :  { %5148 = vst [vmem:[#allocation14_spill] sm:$0xff] %v3175_v6  ;;  %v3178_v9 = vsel %vm392_vm0, %v507_v43, %v511_v53  ;;  %v540_v13 = vshll.u32 %v3152_v39, 16  ;;  %v567_v24 = vor.u32 %v566_v54, %v562_v44  ;;  %v557_v25 = vshll.u32 %v3172_v61, 16  ;;  %v75_v53 = vld [vmem:[%s5059_s0 + $0xbc] sm:$0x1] }
  0x21   :  { %5149 = vst [vmem:[#allocation15_spill] sm:$0xff] %v3178_v9  ;;  %v3189_v27 = vpack.c.b16 %v340_v2, %v340_v2  ;;  %v345_v28 = vunpack.c.l.b16 %v87_v57  ;;  %v571_v30 = vrot.slane %v569_v55, 1  ;;  %v555_v31 = vor.u32 %v554_v62, %v550_v56 }
  0x22   :  { %v542_v34 = vrot.slane %v540_v13, 1  ;;  %v600_v36 = vshll.u32 %v3162_v51, 16  ;;  %v559_v41 = vrot.slane %v557_v25, 1  ;;  %v344_v48 = vunpack.c.l.b16 %v84_v23  ;;  %v96_v13 = vld [vmem:[%s5059_s0 + $0x110] sm:$0x1] }
  0x23   :  { %799 = vrot.lane.b32.xlu2 %v3170_v59, %s2887_s27  ;;  %797 = vrot.lane.b32.xlu1 %v3175_v6, %s2887_s27  ;;  %v545_v43 = vshll.u32 %v3189_v27, 16  ;;  %v3197_v44 = vpack.c.b16 %v345_v28, %v345_v28  ;;  %v598_v54 = vshrl.u32 %v3162_v51, 16  ;;  %v588_v55 = vshll.u32 %v2782_v20, 16  ;;  %v2786_v28 = vld [vmem:[%s5059_s0 + $0x108] sm:$0xff] }
  0x24   :  { %795 = vrot.lane.b32.xlu0 %v3178_v9, %s2887_s27  ;;  %v543_v56 = vor.u32 %v542_v34, %v538_v12  ;;  %v602_v62 = vrot.slane %v600_v36, 1  ;;  %v3208_v2 = vpack.c.b16 %v344_v48, %v344_v48  ;;  %v343_v25 = vunpack.c.l.b16 %v75_v53  ;;  %v93_v48 = vld [vmem:[%s5059_s0 + $0x104] sm:$0x1] }
  0x25   :  { %5150 = vst [vmem:[#allocation16_spill] sm:$0xff] %v3197_v44  ;;  %v547_v57 = vrot.slane %v545_v43, 1  ;;  %v605_v23 = vshll.u32 %v3197_v44, 16  ;;  %v3218_v9 = vsel %vm392_vm0, %v567_v24, %v571_v30  ;;  %v3221_v12 = vsel %vm392_vm0, %v555_v31, %v559_v41  ;;  %v3226_v43 = vld [vmem:[%s5059_s0 + $0xfc] sm:$0xff] }
  0x26   :  { %5151 = vst [vmem:[#allocation17_spill] sm:$0xff] %v3208_v2  ;;  %v586_v34 = vshrl.u32 %v2782_v20, 16  ;;  %v576_v36 = vshll.u32 %v2779_v49, 16  ;;  %v590_v53 = vrot.slane %v588_v55, 1  ;;  %v593_v11 = vshll.u32 %v3208_v2, 16 }
  0x27   :  { %5152 = vst [vmem:[#allocation18_spill] sm:$0xff] %v3218_v9  ;;  %v3232_v52 = vpack.c.b16 %v343_v25, %v343_v25  ;;  %v348_v24 = vunpack.c.l.b16 %v96_v13  ;;  %v3235_v30 = vsel %vm392_vm0, %v543_v56, %v547_v57  ;;  %v603_v20 = vor.u32 %v602_v62, %v598_v54  ;;  %v90_v55 = vld [vmem:[%s5059_s0 + $0xf8] sm:$0x1] }
  0x28   :  { %5153 = vst [vmem:[#allocation19_spill] sm:$0xff] %v3226_v43  ;;  %v574_v31 = vshrl.u32 %v2779_v49, 16  ;;  %v578_v41 = vrot.slane %v576_v36, 1  ;;  %v607_v25 = vrot.slane %v605_v23, 1  ;;  %v636_v56 = vshll.u32 %v2786_v28, 16 }
  0x29   :  { %5154 = vst [vmem:[#allocation20_spill] sm:$0xff] %v3232_v52  ;;  %v581_v13 = vshll.u32 %v3232_v52, 16  ;;  %v347_v57 = vunpack.c.l.b16 %v93_v48  ;;  %v3250_v49 = vpack.c.b16 %v348_v24, %v348_v24  ;;  %v624_v54 = vshll.u32 %v3226_v43, 16  ;;  %v105_v23 = vld [vmem:[%s5059_s0 + $0x134] sm:$0x1] }
  0x2a   :  { %v591_v62 = vor.u32 %v590_v53, %v586_v34  ;;  %v595_v36 = vrot.slane %v593_v11, 1  ;;  %v346_v18 = vunpack.c.l.b16 %v90_v55  ;;  %v579_v48 = vor.u32 %v578_v41, %v574_v31  ;;  %v102_v31 = vld [vmem:[%s5059_s0 + $0x128] sm:$0x1] }
  0x2b   :  { %805 = vrot.lane.b32.xlu2 %v3218_v9, %s2887_s27  ;;  %803 = vrot.lane.b32.xlu1 %v3221_v12, %s2887_s27  ;;  %5156 = vst [vmem:[#allocation22_spill] sm:$0xff] %v3250_v49  ;;  %v3255_v2 = vpack.c.b16 %v347_v57, %v347_v57  ;;  %v583_v1 = vrot.slane %v581_v13, 1  ;;  %v634_v52 = vshrl.u32 %v2786_v28, 16  ;;  %v612_v24 = vshll.u32 %v3240_v63, 16 }
  0x2c   :  { %801 = vrot.lane.b32.xlu0 %v3235_v30, %s2887_s27  ;;  %v3267_v34 = vsel %vm392_vm0, %v603_v20, %v607_v25  ;;  %v638_v11 = vrot.slane %v636_v56, 1  ;;  %v622_v53 = vshrl.u32 %v3226_v43, 16  ;;  %v3270_v55 = vpack.c.b16 %v346_v18, %v346_v18  ;;  %v2788_v18 = vld [vmem:[%s5059_s0 + $0x120] sm:$0xff]  ;;  %v99_v56 = vld [vmem:[%s5059_s0 + $0x11c] sm:$0x1] }
  0x2d   :  { %5157 = vst [vmem:[#allocation23_spill] sm:$0xff] %v3255_v2  ;;  %v641_v28 = vshll.u32 %v3250_v49, 16  ;;  %v626_v41 = vrot.slane %v624_v54, 1  ;;  %v629_v13 = vshll.u32 %v3255_v2, 16  ;;  %v351_v57 = vunpack.c.l.b16 %v105_v23 }
  0x2e   :  { %5158 = vst [vmem:[#allocation24_spill] sm:$0xff] %v3267_v34  ;;  %v596_v35 = vsel %vm392_vm0, %v591_v62, %v595_v36  ;;  %v610_v20 = vshrl.u32 %v3240_v63, 16  ;;  %v614_v25 = vrot.slane %v612_v24, 1  ;;  %v3286_v43 = vsel %vm392_vm0, %v579_v48, %v583_v1  ;;  %v2787_v62 = vld [vmem:[%s5059_s0 + $0x114] sm:$0xff] }
  0x2f   :  { %5159 = vst [vmem:[#allocation25_spill] sm:$0xff] %v3270_v55  ;;  %v617_v54 = vshll.u32 %v3270_v55, 16  ;;  %v672_v23 = vshll.u32 %v3264_v40, 16  ;;  %v350_v49 = vunpack.c.l.b16 %v102_v31  ;;  %v639_v36 = vor.u32 %v638_v11, %v634_v52  ;;  %v114_v31 = vld [vmem:[%s5059_s0 + $0x158] sm:$0x1] }
  0x30   :  { %5160 = vst [vmem:[#allocation26_spill] sm:$0xff] %v3286_v43  ;;  %v3295_v24 = vpack.c.b16 %v351_v57, %v351_v57  ;;  %v643_v2 = vrot.slane %v641_v28, 1  ;;  %v627_v1 = vor.u32 %v626_v41, %v622_v53  ;;  %v631_v48 = vrot.slane %v629_v13, 1  ;;  %v111_v28 = vld [vmem:[%s5059_s0 + $0x14c] sm:$0x1]  ;;  %v3315_v13 = vld [vmem:[%s5059_s0 + $0x150] sm:$0xff] }
  0x31   :  { %v349_v9 = vunpack.c.l.b16 %v99_v56  ;;  %v615_v8 = vor.u32 %v614_v25, %v610_v20  ;;  %v670_v55 = vshrl.u32 %v3264_v40, 16  ;;  %v660_v52 = vshll.u32 %v2788_v18, 16  ;;  %5163 = vst [vmem:[#allocation29_spill] sm:$0xff] %v3315_v13  ;;  %v3326_v56 = vld [vmem:[%s5059_s0 + $0x144] sm:$0xff] }
  0x32   :  { %v619_v11 = vrot.slane %v617_v54, 1  ;;  %v674_v57 = vrot.slane %v672_v23, 1  ;;  %v648_v53 = vshll.u32 %v2787_v62, 16  ;;  %v677_v41 = vshll.u32 %v3295_v24, 16  ;;  %5166 = vst [vmem:[#allocation32_spill] sm:$0xff] %v3326_v56 }
  0x33   :  { %811 = vrot.lane.b32.xlu2 %v3267_v34, %s2887_s27  ;;  %809 = vrot.lane.b32.xlu1 %v596_v35, %s2887_s27  ;;  %v3304_v34 = vpack.c.b16 %v350_v49, %v350_v49  ;;  %v3306_v35 = vpack.c.b16 %v349_v9, %v349_v9  ;;  %v354_v20 = vunpack.c.l.b16 %v114_v31  ;;  %v3318_v49 = vsel %vm392_vm0, %v639_v36, %v643_v2  ;;  %v108_v54 = vld [vmem:[%s5059_s0 + $0x140] sm:$0x1] }
  0x34   :  { %807 = vrot.lane.b32.xlu0 %v3286_v43, %s2887_s27  ;;  %5164 = vst [vmem:[#allocation30_spill] sm:$0xff] %v3318_v49  ;;  %v3321_v25 = vsel %vm392_vm0, %v627_v1, %v631_v48  ;;  %v658_v9 = vshrl.u32 %v2788_v18, 16  ;;  %v662_v23 = vrot.slane %v660_v52, 1  ;;  %v646_v31 = vshrl.u32 %v2787_v62, 16  ;;  %v3339_v48 = vld [vmem:[%s5059_s0 + $0x138] sm:$0xff] }
  0x35   :  { %5161 = vst [vmem:[#allocation27_spill] sm:$0xff] %v3304_v34  ;;  %v665_v43 = vshll.u32 %v3304_v34, 16  ;;  %v353_v63 = vunpack.c.l.b16 %v111_v28  ;;  %v3333_v2 = vsel %vm392_vm0, %v615_v8, %v619_v11  ;;  %v675_v36 = vor.u32 %v674_v57, %v670_v55 }
  0x36   :  { %5162 = vst [vmem:[#allocation28_spill] sm:$0xff] %v3306_v35  ;;  %v650_v1 = vrot.slane %v648_v53, 1  ;;  %v653_v18 = vshll.u32 %v3306_v35, 16  ;;  %v679_v52 = vrot.slane %v677_v41, 1  ;;  %v3343_v44 = vpack.c.b16 %v354_v20, %v354_v20  ;;  %v123_v53 = vld [vmem:[%s5059_s0 + $0x17c] sm:$0x1] }
  0x37   :  { %5165 = vst [vmem:[#allocation31_spill] sm:$0xff] %v3321_v25  ;;  %v708_v62 = vshll.u32 %v3315_v13, 16  ;;  %v352_v28 = vunpack.c.l.b16 %v108_v54  ;;  %v3348_v8 = vpack.c.b16 %v353_v63, %v353_v63  ;;  %v696_v55 = vshll.u32 %v3326_v56, 16  ;;  %v120_v63 = vld [vmem:[%s5059_s0 + $0x170] sm:$0x1] }
  0x38   :  { %5167 = vst [vmem:[#allocation33_spill] sm:$0xff] %v3333_v2  ;;  %v663_v11 = vor.u32 %v662_v23, %v658_v9  ;;  %v667_v57 = vrot.slane %v665_v43, 1  ;;  %v651_v41 = vor.u32 %v650_v1, %v646_v31  ;;  %v655_v20 = vrot.slane %v653_v18, 1  ;;  %v117_v31 = vld [vmem:[%s5059_s0 + $0x164] sm:$0x1] }
  0x39   :  { %5168 = vst [vmem:[#allocation34_spill] sm:$0xff] %v3339_v48  ;;  %v3356_v34 = vpack.c.b16 %v352_v28, %v352_v28  ;;  %v684_v54 = vshll.u32 %v3339_v48, 16  ;;  %v3363_v35 = vsel %vm392_vm0, %v675_v36, %v679_v52  ;;  %v706_v9 = vshrl.u32 %v3315_v13, 16 }
  0x3a   :  { %5169 = vst [vmem:[#allocation35_spill] sm:$0xff] %v3343_v44  ;;  %v710_v43 = vrot.slane %v708_v62, 1  ;;  %v713_v23 = vshll.u32 %v3343_v44, 16  ;;  %v694_v1 = vshrl.u32 %v3326_v56, 16  ;;  %v698_v18 = vrot.slane %v696_v55, 1  ;;  %v2794_v44 = vld [vmem:[%s5059_s0 + $0x168] sm:$0xff] }
  0x3b   :  { %817 = vrot.lane.b32.xlu2 %v3318_v49, %s2887_s27  ;;  %815 = vrot.lane.b32.xlu1 %v3321_v25, %s2887_s27  ;;  %5170 = vst [vmem:[#allocation36_spill] sm:$0xff] %v3348_v8  ;;  %v701_v28 = vshll.u32 %v3348_v8, 16  ;;  %v2795_v49 = vld [vmem:[%s5059_s0 + $0x174] sm:$0xff]  ;;  %v357_v36 = vunpack.c.l.b16 %v123_v53  ;;  %v3376_v52 = vsel %vm392_vm0, %v663_v11, %v667_v57  ;;  %v682_v62 = vshrl.u32 %v3339_v48, 16  ;;  %v3389_v53 = vld [vmem:[%s5059_s0 + $0x15c] sm:$0xff] }
  0x3c   :  { %813 = vrot.lane.b32.xlu0 %v3333_v2, %s2887_s27  ;;  %5171 = vst [vmem:[#allocation37_spill] sm:$0xff] %v3356_v34  ;;  %v356_v13 = vunpack.c.l.b16 %v120_v63  ;;  %v3383_v25 = vsel %vm392_vm0, %v651_v41, %v655_v20  ;;  %v686_v55 = vrot.slane %v684_v54, 1  ;;  %v689_v2 = vshll.u32 %v3356_v34, 16 }
  0x3d   :  { %5172 = vst [vmem:[#allocation38_spill] sm:$0xff] %v3363_v35  ;;  %v355_v11 = vunpack.c.l.b16 %v117_v31  ;;  %v711_v57 = vor.u32 %v710_v43, %v706_v9  ;;  %v715_v51 = vrot.slane %v713_v23, 1  ;;  %v699_v63 = vor.u32 %v698_v18, %v694_v1  ;;  %v129_v43 = vld [vmem:[%s5059_s0 + $0x194] sm:$0x1] }
  0x3e   :  { %5173 = vst [vmem:[#allocation39_spill] sm:$0xff] %v3376_v52  ;;  %v703_v41 = vrot.slane %v701_v28, 1  ;;  %v3395_v20 = vpack.c.b16 %v357_v36, %v357_v36  ;;  %v744_v54 = vshll.u32 %v2795_v49, 16  ;;  %v3399_v8 = vpack.c.b16 %v356_v13, %v356_v13  ;;  %v126_v13 = vld [vmem:[%s5059_s0 + $0x188] sm:$0x1] }
  0x3f   :  { %5174 = vst [vmem:[#allocation40_spill] sm:$0xff] %v3383_v25  ;;  %v732_v56 = vshll.u32 %v2794_v44, 16  ;;  %v687_v31 = vor.u32 %v686_v55, %v682_v62  ;;  %v691_v34 = vrot.slane %v689_v2, 1  ;;  %v3401_v48 = vpack.c.b16 %v355_v11, %v355_v11 }
  0x40   :  { %5175 = vst [vmem:[#allocation41_spill] sm:$0xff] %v3395_v20  ;;  %v720_v9 = vshll.u32 %v3389_v53, 16  ;;  %v3408_v23 = vsel %vm392_vm0, %v711_v57, %v715_v51  ;;  %v742_v1 = vshrl.u32 %v2795_v49, 16  ;;  %v3414_v18 = vsel %vm392_vm0, %v699_v63, %v703_v41  ;;  %v2797_v51 = vld [vmem:[%s5059_s0 + $0x18c] sm:$0xff] }
  0x41   :  { %5176 = vst [vmem:[#allocation42_spill] sm:$0xff] %v3399_v8  ;;  %v746_v2 = vrot.slane %v744_v54, 1  ;;  %v749_v28 = vshll.u32 %v3395_v20, 16  ;;  %v730_v36 = vshrl.u32 %v2794_v44, 16  ;;  %v734_v62 = vrot.slane %v732_v56, 1  ;;  %v2796_v44 = vld [vmem:[%s5059_s0 + $0x180] sm:$0xff] }
  0x42   :  { %5177 = vst [vmem:[#allocation43_spill] sm:$0xff] %v3401_v48  ;;  %v737_v55 = vshll.u32 %v3399_v8, 16  ;;  %v718_v11 = vshrl.u32 %v3389_v53, 16  ;;  %v359_v49 = vunpack.c.l.b16 %v129_v43  ;;  %v3423_v57 = vsel %vm392_vm0, %v687_v31, %v691_v34 }
  0x43   :  { %823 = vrot.lane.b32.xlu2 %v3363_v35, %s2887_s27  ;;  %821 = vrot.lane.b32.xlu1 %v3376_v52, %s2887_s27  ;;  %5178 = vst [vmem:[#allocation44_spill] sm:$0xff] %v3423_v57  ;;  %v722_v35 = vrot.slane %v720_v9, 1  ;;  %v725_v63 = vshll.u32 %v3401_v48, 16  ;;  %v358_v56 = vunpack.c.l.b16 %v126_v13  ;;  %v747_v41 = vor.u32 %v746_v2, %v742_v1 }
  0x44   :  { %819 = vrot.lane.b32.xlu0 %v3383_v25, %s2887_s27  ;;  %v751_v54 = vrot.slane %v749_v28, 1  ;;  %v735_v34 = vor.u32 %v734_v62, %v730_v36  ;;  %v739_v31 = vrot.slane %v737_v55, 1  ;;  %v3435_v9 = vpack.c.b16 %v359_v49, %v359_v49 }
  0x45   :  { %v768_v43 = vshll.u32 %v2797_v51, 16  ;;  %v723_v20 = vor.u32 %v722_v35, %v718_v11  ;;  %v727_v52 = vrot.slane %v725_v63, 1  ;;  %v3437_v8 = vpack.c.b16 %v358_v56, %v358_v56 }
  0x46   :  { %5179 = vst [vmem:[#allocation45_spill] sm:$0xff] %v3435_v9  ;;  %v756_v13 = vshll.u32 %v2796_v44, 16  ;;  %v3440_v25 = vsel %vm392_vm0, %v747_v41, %v751_v54  ;;  %v3443_v48 = vsel %vm392_vm0, %v735_v34, %v739_v31  ;;  %v766_v1 = vshrl.u32 %v2797_v51, 16 }
  0x47   :  { %5180 = vst [vmem:[#allocation46_spill] sm:$0xff] %v3437_v8  ;;  %v770_v2 = vrot.slane %v768_v43, 1  ;;  %v773_v28 = vshll.u32 %v3435_v9, 16  ;;  %v3447_v36 = vsel %vm392_vm0, %v723_v20, %v727_v52  ;;  %v754_v62 = vshrl.u32 %v2796_v44, 16 }
  0x48   :  { %v758_v55 = vrot.slane %v756_v13, 1  ;;  %v761_v35 = vshll.u32 %v3437_v8, 16  ;;  %v842_v11 = vrot.slane %v2955_v5, 1  ;;  %v843_v51 = vrot.slane %v2979_v22, 1  ;;  %v2830_v8 = vld [vmem:[%s5059_s0 + $0x78] sm:$0xff] }
  0x49   :  { %v771_v49 = vor.u32 %v770_v2, %v766_v1  ;;  %v775_v52 = vrot.slane %v773_v28, 1  ;;  %vm841_vm1 = vcmask 1046528   ;;  %v851_v5 = vrot.slane %v2989_v29, 1 }
  0x4a   :  { %v759_v20 = vor.u32 %v758_v55, %v754_v62  ;;  %v763_v63 = vrot.slane %v761_v35, 1  ;;  %v844_v44 = vsel %vm841_vm1, %v842_v11, %v843_v51  ;;  %v852_v22 = vrot.slane %v3016_v47, 1 }
  0x4b   :  { %829 = vrot.lane.b32.xlu2 %v3408_v23, %s2887_s27  ;;  %827 = vrot.lane.b32.xlu1 %v3414_v18, %s2887_s27  ;;  %v3460_v56 = vsel %vm392_vm0, %v771_v49, %v775_v52  ;;  %v848_v54 = vrot.slane %v2947_v3, 1  ;;  %v849_v34 = vrot.slane %v2969_v16, 1  ;;  %v845_v31 = vrot.slane %v2998_v38, 1 }
  0x4c   :  { %825 = vrot.lane.b32.xlu0 %v3423_v57, %s2887_s27  ;;  %5181 = vst [vmem:[#allocation47_spill] sm:$0xff] %v3460_v56  ;;  %v3463_v41 = vsel %vm392_vm0, %v759_v20, %v763_v63  ;;  %v846_v43 = vrot.slane %v3037_v60, 1  ;;  %v3477_v13 = vsel %vm841_vm1, %v851_v5, %v852_v22  ;;  %v860_v16 = vrot.slane %v3045_v7, 1 }
  0x4d   :  { %5182 = vst [vmem:[#allocation48_spill] sm:$0xff] %v3463_v41  ;;  %v3480_v1 = vsel %vm841_vm1, %v848_v54, %v849_v34  ;;  %v861_v47 = vrot.slane %v3089_v42, 1  ;;  %v857_v28 = vrot.slane %v2976_v19, 1  ;;  %v858_v62 = vrot.slane %v2992_v33, 1 }
  0x4e   :  { %v847_v2 = vsel %vm841_vm1, %v845_v31, %v846_v43  ;;  %v854_v55 = vrot.slane %v2939_v0, 1  ;;  %v855_v35 = vrot.slane %v2962_v10, 1  ;;  %v869_v10 = vrot.slane %v3098_v50, 1 }
  0x4f   :  { %v3497_v11 = vsel %vm841_vm1, %v860_v16, %v861_v47  ;;  %v3500_v51 = vsel %vm841_vm1, %v857_v28, %v858_v62  ;;  %v870_v19 = vrot.slane %v3136_v21, 1  ;;  %v863_v33 = vrot.slane %v3032_v58, 1 }
  0x50   :  { %v3503_v7 = vsel %vm841_vm1, %v854_v55, %v855_v35  ;;  %v864_v42 = vrot.slane %v3067_v26, 1  ;;  %v872_v58 = vrot.slane %v3082_v37, 1  ;;  %v873_v26 = vrot.slane %v3116_v4, 1 }
  0x51   :  { %v3518_v49 = vsel %vm841_vm1, %v869_v10, %v870_v19  ;;  %v876_v4 = vrot.slane %v3091_v46, 1  ;;  %v879_v28 = vrot.slane %v3189_v27, 1  ;;  %vm2087_vm2 = vcmask 1041408  }
  0x52   :  { %5184 = vst [vmem:[#allocation50_spill] sm:$0xff] %v3518_v49  ;;  %v3521_v52 = vsel %vm841_vm1, %v863_v33, %v864_v42  ;;  %v3534_v20 = vsel %vm841_vm1, %v872_v58, %v873_v26  ;;  %v912_v26 = vrot.slane %v3295_v24, 1  ;;  %v881_v24 = vrot.slane %v3128_v17, 1 }
  0x53   :  { %835 = vrot.lane.b32.xlu2 %v3440_v25, %s2887_s27  ;;  %833 = vrot.lane.b32.xlu1 %v3443_v48, %s2887_s27  ;;  %5186 = vst [vmem:[#allocation52_spill] sm:$0xff] %v3534_v20  ;;  %vm1478_vm3 = vcmask 31744   ;;  %vm1543_vm4 = vcmask 64512   ;;  %vm1608_vm5 = vcmask 97280   ;;  %vm1673_vm6 = vcmask 130048  }
  0x54   :  { %831 = vrot.lane.b32.xlu0 %v3447_v36, %s2887_s27  ;;  %vm1738_vm7 = vcmask 162816   ;;  %vm1803_vm8 = vcmask 195584   ;;  %vm1868_vm9 = vcmask 228352   ;;  %vm1933_vm10 = vcmask 261120  }
  0x55   :  { %vm2022_vm11 = vcmask 293888   ;;  %vm2476_vm12 = vcmask 1041409  }
  0x5b   :  { %938 = vrot.lane.b32.xlu2 %v844_v44, %s2888_s19  ;;  %839 = vrot.lane.b32.xlu1 %v3460_v56, %s2887_s27 }
  0x5c   :  { %837 = vrot.lane.b32.xlu0 %v3463_v41, %s2887_s27  ;;  %s2889_s27 = smov 12  }
  0x63   :  { %944 = vrot.lane.b32.xlu2 %v3477_v13, %s2888_s19  ;;  %942 = vrot.lane.b32.xlu1 %v3480_v1, %s2888_s19 }
  0x64   :  { %940 = vrot.lane.b32.xlu0 %v847_v2, %s2888_s19 }
  0x65   :  { %v3490_v60 = vpop.permute.xlu2 %785 }
  0x6b   :  { %950 = vrot.lane.b32.xlu2 %v3497_v11, %s2888_s19  ;;  %948 = vrot.lane.b32.xlu1 %v3500_v51, %s2888_s19 }
  0x6c   :  { %946 = vrot.lane.b32.xlu0 %v3503_v7, %s2888_s19 }
  0x6d   :  { %v3511_v0 = vpop.permute.xlu2 %787 }
  0x6e   :  { %5183 = vst [vmem:[#allocation49_spill] sm:$0xff] %v3511_v0  ;;  %v5217_v0 = vld [vmem:[#allocation19_spill] sm:$0xff] }
  0x73   :  { %1030 = vrot.lane.b32.xlu2 %v3082_v37, %s2889_s27  ;;  %956 = vrot.lane.b32.xlu1 %v3518_v49, %s2888_s19  ;;  %v875_v37 = vrot.slane %v3056_v14, 1 }
  0x74   :  { %952 = vrot.lane.b32.xlu0 %v3521_v52, %s2888_s19 }
  0x75   :  { %v3529_v21 = vpop.permute.xlu2 %793  ;;  %v877_v22 = vsel %vm841_vm1, %v875_v37, %v876_v4 }
  0x76   :  { %5185 = vst [vmem:[#allocation51_spill] sm:$0xff] %v3529_v21 }
  0x7b   :  { %1268 = vrot.lane.b32.xlu2 %v3056_v14, %s2890_s20  ;;  %1194 = vrot.lane.b32.xlu1 %v3534_v20, %s2891_s21 }
  0x7c   :  { %1124 = vrot.lane.b32.xlu0 %v3175_v6, %s2892_s22  ;;  %v5207_v6 = vld [vmem:[#allocation16_spill] sm:$0xff] }
  0x7d   :  { %v3542_v63 = vpop.permute.xlu2 %799  ;;  %v3546_v44 = vpop.permute.xlu1 %781 }
  0x7e   :  { %v3548_v5 = vpop.permute.xlu0 %777 }
  0x83   :  { %958 = vrot.lane.b32.xlu2 %v3534_v20, %s2888_s19  ;;  %1432 = vrot.lane.b32.xlu1 %v877_v22, %s2893_s23  ;;  %v894_v20 = vrot.slane %v5207_v6, 1  ;;  %v3733_v6 = vld [vmem:[%s5059_s0 + $0x24] sm:$0xff] }
  0x84   :  { %1362 = vrot.lane.b32.xlu0 %v3170_v59, %s2894_s24 }
  0x85   :  { %v3556_v54 = vpop.permute.xlu2 %805  ;;  %v3558_v34 = vpop.permute.xlu1 %783 }
  0x86   :  { %v3560_v46 = vpop.permute.xlu0 %779 }
  0x8b   :  { %1106 = vrot.lane.b32.xlu2 %v3076_v32, %s2892_s22  ;;  %1032 = vrot.lane.b32.xlu1 %v3056_v14, %s2889_s27 }
  0x8c   :  { %1012 = vrot.lane.b32.xlu0 %v2998_v38, %s2889_s27  ;;  %v878_v38 = vrot.slane %v3152_v39, 1 }
  0x8d   :  { %v3568_v31 = vpop.permute.xlu2 %811  ;;  %v3570_v43 = vpop.permute.xlu1 %791 }
  0x8e   :  { %5187 = vst [vmem:[#allocation53_spill] sm:$0xff] %v3570_v43  ;;  %v3572_v16 = vpop.permute.xlu0 %789  ;;  %v3599_v55 = vsel %vm841_vm1, %v878_v38, %v879_v28 }
  0x8f   :  { %5188 = vst [vmem:[#allocation54_spill] sm:$0xff] %v3572_v16 }
  0x93   :  { %1196 = vrot.lane.b32.xlu2 %v877_v22, %s2891_s21  ;;  %1176 = vrot.lane.b32.xlu1 %v847_v2, %s2891_s21 }
  0x94   :  { %1126 = vrot.lane.b32.xlu0 %v3170_v59, %s2892_s22 }
  0x95   :  { %v3578_v32 = vpop.permute.xlu2 %817  ;;  %v3580_v47 = vpop.permute.xlu1 %797 }
  0x96   :  { %5189 = vst [vmem:[#allocation55_spill] sm:$0xff] %v3578_v32  ;;  %v3582_v14 = vpop.permute.xlu0 %795 }
  0x9b   :  { %1344 = vrot.lane.b32.xlu2 %v3014_v45, %s2894_s24  ;;  %1270 = vrot.lane.b32.xlu1 %v3152_v39, %s2890_s20 }
  0x9c   :  { %1250 = vrot.lane.b32.xlu0 %v2947_v3, %s2890_s20 }
  0x9d   :  { %v3592_v59 = vpop.permute.xlu2 %823  ;;  %v3594_v2 = vpop.permute.xlu1 %803 }
  0x9e   :  { %v3596_v62 = vpop.permute.xlu0 %801 }
  0xa3   :  { %1434 = vrot.lane.b32.xlu2 %v3599_v55, %s2893_s23  ;;  %1414 = vrot.lane.b32.xlu1 %v3480_v1, %s2893_s23 }
  0xa4   :  { %1364 = vrot.lane.b32.xlu0 %v3235_v30, %s2894_s24 }
  0xa5   :  { %v3607_v27 = vpop.permute.xlu2 %829  ;;  %v3609_v35 = vpop.permute.xlu1 %809 }
  0xa6   :  { %5190 = vst [vmem:[#allocation56_spill] sm:$0xff] %v3609_v35  ;;  %v3611_v10 = vpop.permute.xlu0 %807 }
  0xa7   :  { %5191 = vst [vmem:[#allocation57_spill] sm:$0xff] %v3611_v10 }
  0xab   :  { %1034 = vrot.lane.b32.xlu2 %v3152_v39, %s2889_s27  ;;  %1014 = vrot.lane.b32.xlu1 %v2947_v3, %s2889_s27 }
  0xac   :  { %960 = vrot.lane.b32.xlu0 %v877_v22, %s2888_s19  ;;  %v882_v22 = vrot.slane %v3172_v61, 1 }
  0xad   :  { %v3618_v19 = vpop.permute.xlu2 %835  ;;  %v3620_v33 = vpop.permute.xlu1 %815 }
  0xae   :  { %5192 = vst [vmem:[#allocation58_spill] sm:$0xff] %v3618_v19  ;;  %v3622_v42 = vpop.permute.xlu0 %813  ;;  %v5199_v19 = vld [vmem:[#allocation34_spill] sm:$0xff] }
  0xaf   :  { %v914_v43 = vrot.slane %v5199_v19, 1 }
  0xb3   :  { %1178 = vrot.lane.b32.xlu2 %v3480_v1, %s2891_s21  ;;  %1128 = vrot.lane.b32.xlu1 %v3235_v30, %s2892_s22  ;;  %v911_v1 = vrot.slane %v3264_v40, 1 }
  0xb4   :  { %1108 = vrot.lane.b32.xlu0 %v3014_v45, %s2892_s22 }
  0xb5   :  { %v3630_v39 = vpop.permute.xlu2 %938  ;;  %v3632_v3 = vpop.permute.xlu1 %821  ;;  %v3651_v4 = vsel %vm841_vm1, %v911_v1, %v912_v26  ;;  %v3668_v1 = vsel %vm841_vm1, %v881_v24, %v882_v22  ;;  %v2002_v26 = vld [vmem:[%s5060_s1 + $0x10] sm:$0x3]  ;;  %v5200_v24 = vld [vmem:[#allocation37_spill] sm:$0xff] }
  0xb6   :  { %5193 = vst [vmem:[#allocation59_spill] sm:$0xff] %v3632_v3  ;;  %v3634_v58 = vpop.permute.xlu0 %819  ;;  %v2016_v21 = vunpack.c.l.b16 %v2002_v26  ;;  %v915_v22 = vrot.slane %v5200_v24, 1 }
  0xb7   :  { %5194 = vst [vmem:[#allocation60_spill] sm:$0xff] %v3634_v58 }
  0xb8   :  { %5195 = vst [vmem:[#allocation61_spill] sm:$0xff] %v3651_v4  ;;  %v2019_v3 = vpack.c.b16 %v2016_v21, %v2016_v21  ;;  %v3686_v21 = vsel %vm841_vm1, %v914_v43, %v915_v22  ;;  %v5205_v43 = vld [vmem:[#allocation36_spill] sm:$0xff] }
  0xb9   :  { %5203 = vst [vmem:[#allocation65_spill] sm:$0xff] %v3686_v21  ;;  %v918_v24 = vrot.slane %v5205_v43, 1  ;;  %v2800_v22 = vld [vmem:[%s5060_s1] sm:$0xff] }
  0xba   :  { %v2089_v58 = vsel %vm2087_vm2, %v2019_v3, 0  ;;  %v5206_v43 = vld [vmem:[#allocation13_spill] sm:$0xff] }
  0xbb   :  { %1272 = vrot.lane.b32.xlu2 %v3128_v17, %s2890_s20  ;;  %1252 = vrot.lane.b32.xlu1 %v2989_v29, %s2890_s20  ;;  %v893_v35 = vrot.slane %v5206_v43, 1 }
  0xbc   :  { %1198 = vrot.lane.b32.xlu0 %v3599_v55, %s2891_s21  ;;  %2806 = vmatpush.bf16.msra.mxu1 %v2089_v58 }
  0xbd   :  { %v3644_v45 = vpop.permute.xlu2 %944  ;;  %v3646_v30 = vpop.permute.xlu1 %827  ;;  %2096 = vmatpush.bf16.msra.mxu0 %v2089_v58  ;;  %2808 = vmatpush.bf16.msra.mxu3 %v2089_v58 }
  0xbe   :  { %v3648_v37 = vpop.permute.xlu0 %825  ;;  %2807 = vmatpush.bf16.msra.mxu2 %v2089_v58 }
  0xc3   :  { %984 = vrot.lane.b32.xlu2 %v3651_v4, %s2888_s19  ;;  %1366 = vrot.lane.b32.xlu1 %v3221_v12, %s2894_s24 }
  0xc4   :  { %1346 = vrot.lane.b32.xlu0 %v3059_v15, %s2894_s24 }
  0xc5   :  { %v3659_v29 = vpop.permute.xlu2 %950  ;;  %v3663_v38 = vpop.permute.xlu1 %833 }
  0xc6   :  { %5196 = vst [vmem:[#allocation62_spill] sm:$0xff] %v3659_v29  ;;  %v3665_v28 = vpop.permute.xlu0 %831  ;;  %v2801_v29 = vld [vmem:[%s5060_s1 + $0x8] sm:$0xff] }
  0xc7   :  { %5197 = vst [vmem:[#allocation63_spill] sm:$0xff] %v3663_v38  ;;  %2809 = vmatpush.bf16.msra.mxu1 %v2801_v29  ;;  %2097 = vmatpush.bf16.msra.mxu0 %v2801_v29 }
  0xc8   :  { %5198 = vst [vmem:[#allocation64_spill] sm:$0xff] %v3665_v28  ;;  %2811 = vmatpush.bf16.msra.mxu3 %v2801_v29  ;;  %2810 = vmatpush.bf16.msra.mxu2 %v2801_v29 }
  0xcb   :  { %1058 = vrot.lane.b32.xlu2 %v5199_v19, %s2889_s27  ;;  %1436 = vrot.lane.b32.xlu1 %v3668_v1, %s2893_s23  ;;  %v5204_v19 = vld [vmem:[#allocation32_spill] sm:$0xff] }
  0xcc   :  { %1416 = vrot.lane.b32.xlu0 %v3477_v13, %s2893_s23  ;;  %v917_v58 = vrot.slane %v5204_v19, 1  ;;  %2812 = vmatpush.bf16.msra.mxu1 %v2800_v22 }
  0xcd   :  { %v1031_v61 = vpop.permute.xlu2 %1030  ;;  %v3681_v38 = vpop.permute.xlu1 %839  ;;  %2098 = vmatpush.bf16.msra.mxu0 %v2800_v22  ;;  %2814 = vmatpush.bf16.msra.mxu3 %v2800_v22 }
  0xce   :  { %5201 = vst [vmem:[#allocation34_spill] sm:$0xff] %v3681_v38  ;;  %v3683_v26 = vpop.permute.xlu0 %837  ;;  %v3707_v16 = vsel %vm841_vm1, %v917_v58, %v918_v24  ;;  %2813 = vmatpush.bf16.msra.mxu2 %v2800_v22  ;;  %v3724_v24 = vsel %vm841_vm1, %v893_v35, %v894_v20  ;;  %v5210_v20 = vld [vmem:[#allocation21_spill] sm:$0xff] }
  0xcf   :  { %5202 = vst [vmem:[#allocation37_spill] sm:$0xff] %v3683_v26 }
  0xd3   :  { %1296 = vrot.lane.b32.xlu2 %v5204_v19, %s2890_s20  ;;  %1222 = vrot.lane.b32.xlu1 %v3686_v21, %s2891_s21 }
  0xd4   :  { %1152 = vrot.lane.b32.xlu0 %v3423_v57, %s2892_s22 }
  0xd5   :  { %v1269_v3 = vpop.permute.xlu2 %1268  ;;  %v3702_v38 = vpop.permute.xlu1 %942 }
  0xd6   :  { %v3704_v26 = vpop.permute.xlu0 %940 }
  0xdb   :  { %962 = vrot.lane.b32.xlu2 %v3599_v55, %s2888_s19  ;;  %1460 = vrot.lane.b32.xlu1 %v3707_v16, %s2893_s23 }
  0xdc   :  { %1390 = vrot.lane.b32.xlu0 %v3414_v18, %s2894_s24 }
  0xdd   :  { %v3717_v29 = vpop.permute.xlu2 %958  ;;  %v3719_v9 = vpop.permute.xlu1 %948 }
  0xde   :  { %5208 = vst [vmem:[#allocation32_spill] sm:$0xff] %v3719_v9  ;;  %v3721_v58 = vpop.permute.xlu0 %946 }
  0xe3   :  { %972 = vrot.lane.b32.xlu2 %v3724_v24, %s2888_s19  ;;  %1036 = vrot.lane.b32.xlu1 %v3128_v17, %s2889_s27  ;;  %v1498_v17 = vsel %vm1478_vm3, %v3098_v50, %v3582_v14  ;;  %v5211_v14 = vld [vmem:[#allocation33_spill] sm:$0xff] }
  0xe4   :  { %1016 = vrot.lane.b32.xlu0 %v3733_v6, %s2889_s27 }
  0xe5   :  { %v3737_v55 = vpop.permute.xlu2 %1106  ;;  %v957_v22 = vpop.permute.xlu1 %956 }
  0xe6   :  { %v3739_v43 = vpop.permute.xlu0 %952  ;;  %v1563_v35 = vsel %vm1543_vm4, %v1498_v17, %v957_v22  ;;  %v5212_v22 = vld [vmem:[#allocation25_spill] sm:$0xff] }
  0xe7   :  { %5209 = vst [vmem:[#allocation36_spill] sm:$0xff] %v3739_v43  ;;  %v1628_v28 = vsel %vm1608_vm5, %v1563_v35, %v1031_v61  ;;  %v897_v17 = vrot.slane %v5212_v22, 1 }
  0xeb   :  { %1046 = vrot.lane.b32.xlu2 %v5210_v20, %s2889_s27  ;;  %1130 = vrot.lane.b32.xlu1 %v3221_v12, %s2892_s22 }
  0xec   :  { %1110 = vrot.lane.b32.xlu0 %v3059_v15, %s2892_s22  ;;  %v896_v15 = vrot.slane %v5210_v20, 1 }
  0xed   :  { %v3751_v56 = vpop.permute.xlu2 %1196  ;;  %v1195_v43 = vpop.permute.xlu1 %1194 }
  0xee   :  { %v1125_v57 = vpop.permute.xlu0 %1124 }
  0xef   :  { %v1693_v50 = vsel %vm1673_vm6, %v1628_v28, %v1125_v57 }
  0xf0   :  { %v1758_v12 = vsel %vm1738_vm7, %v1693_v50, %v1195_v43  ;;  %v3767_v50 = vsel %vm841_vm1, %v896_v15, %v897_v17  ;;  %v5214_v17 = vld [vmem:[#allocation18_spill] sm:$0xff] }
  0xf1   :  { %v1823_v57 = vsel %vm1803_vm8, %v1758_v12, %v1269_v3  ;;  %v3778_v3 = vld [vmem:[%s5059_s0 + $0x30] sm:$0xff] }
  0xf3   :  { %1140 = vrot.lane.b32.xlu2 %v5211_v14, %s2892_s22  ;;  %1200 = vrot.lane.b32.xlu1 %v3668_v1, %s2891_s21  ;;  %v5218_v14 = vld [vmem:[#allocation31_spill] sm:$0xff] }
  0xf4   :  { %1180 = vrot.lane.b32.xlu0 %v3477_v13, %s2891_s21  ;;  %v5213_v13 = vld [vmem:[#allocation10_spill] sm:$0xff] }
  0xf5   :  { %v1345_v61 = vpop.permute.xlu2 %1344  ;;  %v1433_v35 = vpop.permute.xlu1 %1432 }
  0xf6   :  { %v1363_v28 = vpop.permute.xlu0 %1362 }
  0xf7   :  { %v1888_v43 = vsel %vm1868_vm9, %v1823_v57, %v1363_v28  ;;  %v5215_v57 = vld [vmem:[#allocation12_spill] sm:$0xff] }
  0xf8   :  { %v1953_v20 = vsel %vm1933_vm10, %v1888_v43, %v1433_v35  ;;  %v884_v35 = vrot.slane %v5213_v13, 1  ;;  %v885_v28 = vrot.slane %v5215_v57, 1  ;;  %v5216_v43 = vld [vmem:[#allocation5_spill] sm:$0xff] }
  0xf9   :  { %2723 = vmatmul.msk.bf16.vlgmr.msra.gmra.mxu1 %vm2022_vm11, %v1953_v20 }
  0xfa   :  { %v3793_v9 = vsel %vm841_vm1, %v884_v35, %v885_v28 }
  0xfb   :  { %1210 = vrot.lane.b32.xlu2 %v3767_v50, %s2891_s21  ;;  %1274 = vrot.lane.b32.xlu1 %v5213_v13, %s2890_s20 }
  0xfc   :  { %1254 = vrot.lane.b32.xlu0 %v3778_v3, %s2890_s20 }
  0xfd   :  { %v1435_v12 = vpop.permute.xlu2 %1434  ;;  %v1033_v15 = vpop.permute.xlu1 %1032 }
  0xfe   :  { %v1013_v22 = vpop.permute.xlu0 %1012 }
 0x103   :  { %986 = vrot.lane.b32.xlu2 %v3686_v21, %s2888_s19  ;;  %1368 = vrot.lane.b32.xlu1 %v5214_v17, %s2894_s24  ;;  %v2829_v21 = vld [vmem:[%s5059_s0] sm:$0xff] }
 0x104   :  { %1348 = vrot.lane.b32.xlu0 %v5216_v43, %s2894_s24  ;;  %v1480_v13 = vsel %vm1478_vm3, %v2829_v21, %v3548_v5  ;;  %v1500_v5 = vsel %vm1478_vm3, %v2830_v8, %v3580_v47 }
 0x105   :  { %v3790_v20 = vpop.permute.xlu2 %1034  ;;  %v1177_v49 = vpop.permute.xlu1 %1176  ;;  %v1545_v57 = vsel %vm1543_vm4, %v1480_v13, %v3630_v39  ;;  %v1565_v21 = vsel %vm1543_vm4, %v1500_v5, %v3717_v29 }
 0x106   :  { %v1127_v32 = vpop.permute.xlu0 %1126  ;;  %v1610_v28 = vsel %vm1608_vm5, %v1545_v57, %v1013_v22  ;;  %v1630_v13 = vsel %vm1608_vm5, %v1565_v21, %v1033_v15  ;;  %v5221_v21 = vld [vmem:[#allocation35_spill] sm:$0xff] }
 0x107   :  { %v1675_v39 = vsel %vm1673_vm6, %v1610_v28, %v3737_v55  ;;  %v1695_v22 = vsel %vm1673_vm6, %v1630_v13, %v1127_v32  ;;  %v899_v32 = vrot.slane %v5217_v0, 1  ;;  %v5219_v55 = vld [vmem:[#allocation23_spill] sm:$0xff] }
 0x108   :  { %v1740_v4 = vsel %vm1738_vm7, %v1675_v39, %v1177_v49  ;;  %v1760_v47 = vsel %vm1738_vm7, %v1695_v22, %v3751_v56  ;;  %v921_v39 = vrot.slane %v5221_v21, 1 }
 0x10b   :  { %1438 = vrot.lane.b32.xlu2 %v3793_v9, %s2893_s23  ;;  %1418 = vrot.lane.b32.xlu1 %v3503_v7, %s2893_s23 }
 0x10c   :  { %1284 = vrot.lane.b32.xlu0 %v5217_v0, %s2890_s20 }
 0x10d   :  { %v3808_v35 = vpop.permute.xlu2 %1178  ;;  %v1271_v10 = vpop.permute.xlu1 %1270 }
 0x10e   :  { %v1251_v41 = vpop.permute.xlu0 %1250 }
 0x10f   :  { %v1805_v57 = vsel %vm1803_vm8, %v1740_v4, %v1251_v41  ;;  %v900_v41 = vrot.slane %v5219_v55, 1  ;;  %v1825_v4 = vsel %vm1803_vm8, %v1760_v47, %v1271_v10 }
 0x110   :  { %v1870_v49 = vsel %vm1868_vm9, %v1805_v57, %v1345_v61  ;;  %v5220_v61 = vld [vmem:[#allocation29_spill] sm:$0xff] }
 0x111   :  { %v3842_v56 = vsel %vm841_vm1, %v899_v32, %v900_v41  ;;  %v920_v5 = vrot.slane %v5220_v61, 1  ;;  %v2832_v41 = vld [vmem:[%s5059_s0 + $0x84] sm:$0xff] }
 0x113   :  { %1154 = vrot.lane.b32.xlu2 %v3414_v18, %s2892_s22  ;;  %1378 = vrot.lane.b32.xlu1 %v5218_v14, %s2894_s24  ;;  %v3853_v22 = vsel %vm841_vm1, %v920_v5, %v921_v39 }
 0x114   :  { %1060 = vrot.lane.b32.xlu0 %v5204_v19, %s2889_s27 }
 0x115   :  { %v1273_v8 = vpop.permute.xlu2 %1272  ;;  %v1415_v29 = vpop.permute.xlu1 %1414 }
 0x116   :  { %v1365_v18 = vpop.permute.xlu0 %1364  ;;  %v1935_v15 = vsel %vm1933_vm10, %v1870_v49, %v1415_v29  ;;  %v3866_v49 = vld [vmem:[%s5059_s0 + $0xa8] sm:$0xff] }
 0x117   :  { %v1890_v28 = vsel %vm1868_vm9, %v1825_v4, %v1365_v18  ;;  %2714 = vmatmul.msk.bf16.vlgmr.msra.gmra.mxu0 %vm2022_vm11, %v1935_v15  ;;  %v1502_v4 = vsel %vm1478_vm3, %v2832_v41, %v3542_v63 }
 0x118   :  { %v1955_v19 = vsel %vm1933_vm10, %v1890_v28, %v1435_v12 }
 0x119   :  { %2724 = vmatmul.msk.bf16.gmra.mxu1 %vm2022_vm11, %v1955_v19 }
 0x11b   :  { %1298 = vrot.lane.b32.xlu2 %v5220_v61, %s2890_s20  ;;  %1224 = vrot.lane.b32.xlu1 %v3707_v16, %s2891_s21 }
 0x11c   :  { %1448 = vrot.lane.b32.xlu0 %v3842_v56, %s2893_s23 }
 0x11d   :  { %v985_v10 = vpop.permute.xlu2 %984  ;;  %v1015_v12 = vpop.permute.xlu1 %1014 }
 0x11e   :  { %v961_v13 = vpop.permute.xlu0 %960 }
 0x11f   :  { %v1567_v18 = vsel %vm1543_vm4, %v1502_v4, %v961_v13 }
 0x123   :  { %964 = vrot.lane.b32.xlu2 %v3668_v1, %s2888_s19  ;;  %1462 = vrot.lane.b32.xlu1 %v3853_v22, %s2893_s23 }
 0x124   :  { %1392 = vrot.lane.b32.xlu0 %v3408_v23, %s2894_s24 }
 0x125   :  { %v1059_v57 = vpop.permute.xlu2 %1058  ;;  %v1129_v47 = vpop.permute.xlu1 %1128 }
 0x126   :  { %v1109_v29 = vpop.permute.xlu0 %1108 }
 0x12b   :  { %974 = vrot.lane.b32.xlu2 %v3767_v50, %s2888_s19  ;;  %1038 = vrot.lane.b32.xlu1 %v3866_v49, %s2889_s27 }
 0x12c   :  { %1018 = vrot.lane.b32.xlu0 %v3778_v3, %s2889_s27 }
 0x12d   :  { %v1297_v1 = vpop.permute.xlu2 %1296  ;;  %v1253_v32 = vpop.permute.xlu1 %1252 }
 0x12e   :  { %v1199_v55 = vpop.permute.xlu0 %1198 }
 0x133   :  { %1048 = vrot.lane.b32.xlu2 %v5217_v0, %s2889_s27  ;;  %1132 = vrot.lane.b32.xlu1 %v5214_v17, %s2892_s22  ;;  %v2833_v0 = vld [vmem:[%s5059_s0 + $0xc] sm:$0xff]  ;;  %v1632_v17 = vsel %vm1608_vm5, %v1567_v18, %v3790_v20 }
 0x134   :  { %1112 = vrot.lane.b32.xlu0 %v5216_v43, %s2892_s22  ;;  %v1482_v19 = vsel %vm1478_vm3, %v2833_v0, %v3560_v46  ;;  %v1697_v43 = vsel %vm1673_vm6, %v1632_v17, %v1129_v47  ;;  %v5222_v17 = vld [vmem:[#allocation26_spill] sm:$0xff] }
 0x135   :  { %v3884_v15 = vpop.permute.xlu2 %962  ;;  %v1367_v28 = vpop.permute.xlu1 %1366  ;;  %v1547_v63 = vsel %vm1543_vm4, %v1482_v19, %v3704_v26  ;;  %v1762_v13 = vsel %vm1738_vm7, %v1697_v43, %v1199_v55  ;;  %v5223_v43 = vld [vmem:[#allocation20_spill] sm:$0xff] }
 0x136   :  { %v1347_v5 = vpop.permute.xlu0 %1346  ;;  %v1612_v21 = vsel %vm1608_vm5, %v1547_v63, %v1015_v12  ;;  %v1827_v26 = vsel %vm1803_vm8, %v1762_v13, %v1273_v8 }
 0x137   :  { %v1677_v39 = vsel %vm1673_vm6, %v1612_v21, %v1109_v29  ;;  %v1892_v47 = vsel %vm1868_vm9, %v1827_v26, %v1367_v28 }
 0x138   :  { %v1742_v46 = vsel %vm1738_vm7, %v1677_v39, %v3808_v35  ;;  %v3929_v35 = vld [vmem:[%s5059_s0 + $0x3c] sm:$0xff] }
 0x139   :  { %v1807_v12 = vsel %vm1803_vm8, %v1742_v46, %v1253_v32  ;;  %v1526_v32 = vsel %vm1478_vm3, %v3264_v40, %v3592_v59  ;;  %v888_v40 = vrot.slane %v5223_v43, 1  ;;  %v5224_v59 = vld [vmem:[#allocation6_spill] sm:$0xff] }
 0x13a   :  { %v1591_v28 = vsel %vm1543_vm4, %v1526_v32, %v985_v10  ;;  %v5226_v32 = vld [vmem:[#allocation22_spill] sm:$0xff] }
 0x13b   :  { %1142 = vrot.lane.b32.xlu2 %v5218_v14, %s2892_s22  ;;  %1202 = vrot.lane.b32.xlu1 %v3793_v9, %s2891_s21  ;;  %v1872_v14 = vsel %vm1868_vm9, %v1807_v12, %v1347_v5  ;;  %v1656_v19 = vsel %vm1608_vm5, %v1591_v28, %v1059_v57 }
 0x13c   :  { %1182 = vrot.lane.b32.xlu0 %v3503_v7, %s2891_s21  ;;  %v3922_v7 = vld [vmem:[%s5059_s0 + $0xb4] sm:$0xff] }
 0x13d   :  { %v3908_v20 = vpop.permute.xlu2 %972  ;;  %v1437_v29 = vpop.permute.xlu1 %1436  ;;  %v887_v21 = vrot.slane %v3922_v7, 1 }
 0x13e   :  { %v1417_v55 = vpop.permute.xlu0 %1416  ;;  %v1957_v41 = vsel %vm1933_vm10, %v1892_v47, %v1437_v29 }
 0x13f   :  { %v1937_v4 = vsel %vm1933_vm10, %v1872_v14, %v1417_v55  ;;  %2725 = vmatmul.msk.bf16.gmra.mxu1 %vm2022_vm11, %v1957_v41  ;;  %v3955_v46 = vsel %vm841_vm1, %v887_v21, %v888_v40  ;;  %v5225_v14 = vld [vmem:[#allocation30_spill] sm:$0xff] }
 0x140   :  { %2715 = vmatmul.msk.bf16.gmra.mxu0 %vm2022_vm11, %v1937_v4 }
 0x143   :  { %1212 = vrot.lane.b32.xlu2 %v3842_v56, %s2891_s21  ;;  %1276 = vrot.lane.b32.xlu1 %v3922_v7, %s2890_s20 }
 0x144   :  { %1256 = vrot.lane.b32.xlu0 %v3929_v35, %s2890_s20 }
 0x145   :  { %v3933_v8 = vpop.permute.xlu2 %1046  ;;  %v1223_v18 = vpop.permute.xlu1 %1222 }
 0x146   :  { %v1153_v0 = vpop.permute.xlu0 %1152 }
 0x147   :  { %v1721_v5 = vsel %vm1673_vm6, %v1656_v19, %v1153_v0  ;;  %v5227_v19 = vld [vmem:[#allocation43_spill] sm:$0xff] }
 0x148   :  { %v1786_v63 = vsel %vm1738_vm7, %v1721_v5, %v1223_v18  ;;  %v903_v18 = vrot.slane %v5226_v32, 1  ;;  %v924_v5 = vrot.slane %v5227_v19, 1 }
 0x149   :  { %v1851_v39 = vsel %vm1803_vm8, %v1786_v63, %v1297_v1  ;;  %v3966_v1 = vld [vmem:[%s5059_s0 + $0x108] sm:$0xff] }
 0x14a   :  { %v902_v4 = vrot.slane %v3966_v1, 1 }
 0x14b   :  { %988 = vrot.lane.b32.xlu2 %v3707_v16, %s2888_s19  ;;  %1370 = vrot.lane.b32.xlu1 %v5222_v17, %s2894_s24 }
 0x14c   :  { %1350 = vrot.lane.b32.xlu0 %v5224_v59, %s2894_s24  ;;  %v3983_v0 = vsel %vm841_vm1, %v902_v4, %v903_v18 }
 0x14d   :  { %v3950_v10 = vpop.permute.xlu2 %1140  ;;  %v1461_v57 = vpop.permute.xlu1 %1460 }
 0x14e   :  { %v1391_v13 = vpop.permute.xlu0 %1390 }
 0x14f   :  { %v1916_v16 = vsel %vm1868_vm9, %v1851_v39, %v1391_v13  ;;  %v2837_v39 = vld [vmem:[%s5059_s0 + $0x90] sm:$0xff] }
 0x150   :  { %v1981_v26 = vsel %vm1933_vm10, %v1916_v16, %v1461_v57  ;;  %v1504_v13 = vsel %vm1478_vm3, %v2837_v39, %v3596_v62 }
 0x151   :  { %2737 = vmatmul.msk.bf16.vlgmr.msra.gmra.mxu3 %vm2022_vm11, %v1981_v26 }
 0x153   :  { %1440 = vrot.lane.b32.xlu2 %v3955_v46, %s2893_s23  ;;  %1420 = vrot.lane.b32.xlu1 %v3500_v51, %s2893_s23 }
 0x154   :  { %1286 = vrot.lane.b32.xlu0 %v3966_v1, %s2890_s20 }
 0x155   :  { %v3970_v12 = vpop.permute.xlu2 %1210  ;;  %v1037_v47 = vpop.permute.xlu1 %1036 }
 0x156   :  { %v1017_v29 = vpop.permute.xlu0 %1016 }
 0x15b   :  { %1156 = vrot.lane.b32.xlu2 %v3408_v23, %s2892_s22  ;;  %1380 = vrot.lane.b32.xlu1 %v5225_v14, %s2894_s24 }
 0x15c   :  { %1062 = vrot.lane.b32.xlu0 %v5220_v61, %s2889_s27  ;;  %v923_v61 = vrot.slane %v3389_v53, 1 }
 0x15d   :  { %v3978_v55 = vpop.permute.xlu2 %986  ;;  %v1131_v41 = vpop.permute.xlu1 %1130 }
 0x15e   :  { %v1111_v28 = vpop.permute.xlu0 %1110  ;;  %v3994_v43 = vsel %vm841_vm1, %v923_v61, %v924_v5 }
 0x163   :  { %1300 = vrot.lane.b32.xlu2 %v3389_v53, %s2890_s20  ;;  %1226 = vrot.lane.b32.xlu1 %v3853_v22, %s2891_s21 }
 0x164   :  { %1450 = vrot.lane.b32.xlu0 %v3983_v0, %s2893_s23 }
 0x165   :  { %v1439_v23 = vpop.permute.xlu2 %1438  ;;  %v1201_v63 = vpop.permute.xlu1 %1200 }
 0x166   :  { %v1181_v21 = vpop.permute.xlu0 %1180 }
 0x16b   :  { %966 = vrot.lane.b32.xlu2 %v3793_v9, %s2888_s19  ;;  %1464 = vrot.lane.b32.xlu1 %v3994_v43, %s2893_s23  ;;  %v1569_v9 = vsel %vm1543_vm4, %v1504_v13, %v3884_v15 }
 0x16c   :  { %1394 = vrot.lane.b32.xlu0 %v3447_v36, %s2894_s24  ;;  %v1634_v16 = vsel %vm1608_vm5, %v1569_v9, %v1037_v47 }
 0x16d   :  { %v4002_v40 = vpop.permute.xlu2 %1154  ;;  %v1275_v57 = vpop.permute.xlu1 %1274  ;;  %v1699_v26 = vsel %vm1673_vm6, %v1634_v16, %v1131_v41 }
 0x16e   :  { %v1255_v53 = vpop.permute.xlu0 %1254  ;;  %v1764_v4 = vsel %vm1738_vm7, %v1699_v26, %v1201_v63 }
 0x16f   :  { %v1829_v62 = vsel %vm1803_vm8, %v1764_v4, %v1275_v57  ;;  %v4068_v4 = vld [vmem:[%s5059_s0 + $0xe4] sm:$0xff] }
 0x173   :  { %976 = vrot.lane.b32.xlu2 %v3842_v56, %s2888_s19  ;;  %1040 = vrot.lane.b32.xlu1 %v3922_v7, %s2889_s27  ;;  %v2838_v56 = vld [vmem:[%s5059_s0 + $0x18] sm:$0xff] }
 0x174   :  { %1020 = vrot.lane.b32.xlu0 %v3929_v35, %s2889_s27  ;;  %v1484_v41 = vsel %vm1478_vm3, %v2838_v56, %v3546_v44 }
 0x175   :  { %v4020_v32 = vpop.permute.xlu2 %1298  ;;  %v1369_v15 = vpop.permute.xlu1 %1368  ;;  %v1549_v19 = vsel %vm1543_vm4, %v1484_v41, %v3702_v38  ;;  %v4089_v41 = vld [vmem:[%s5059_s0 + $0x48] sm:$0xff] }
 0x176   :  { %v1894_v47 = vsel %vm1868_vm9, %v1829_v62, %v1369_v15  ;;  %v1349_v18 = vpop.permute.xlu0 %1348  ;;  %v1614_v5 = vsel %vm1608_vm5, %v1549_v19, %v1017_v29 }
 0x177   :  { %v1959_v61 = vsel %vm1933_vm10, %v1894_v47, %v1439_v23  ;;  %v1679_v63 = vsel %vm1673_vm6, %v1614_v5, %v1111_v28  ;;  %v78_v28 = vld [vmem:[%s5059_s0 + $0xc8] sm:$0x1] }
 0x178   :  { %2726 = vmatmul.msk.bf16.gmra.mxu1 %vm2022_vm11, %v1959_v61  ;;  %v1744_v57 = vsel %vm1738_vm7, %v1679_v63, %v1181_v21 }
 0x179   :  { %v1809_v44 = vsel %vm1803_vm8, %v1744_v57, %v1255_v53 }
 0x17a   :  { %v1874_v23 = vsel %vm1868_vm9, %v1809_v44, %v1349_v18 }
 0x17b   :  { %1050 = vrot.lane.b32.xlu2 %v3966_v1, %s2889_s27  ;;  %1134 = vrot.lane.b32.xlu1 %v5222_v17, %s2892_s22  ;;  %v4054_v17 = vld [vmem:[%s5059_s0 + $0xc0] sm:$0xff] }
 0x17c   :  { %1114 = vrot.lane.b32.xlu0 %v5224_v59, %s2892_s22  ;;  %v1078_v59 = vunpack.c.l.b16 %v78_v28  ;;  %v1085_v9 = vshll.u32 %v4054_v17, 16  ;;  %v1083_v62 = vshrl.u32 %v4054_v17, 16 }
 0x17d   :  { %v4043_v38 = vpop.permute.xlu2 %964  ;;  %v1419_v29 = vpop.permute.xlu1 %1418 }
 0x17e   :  { %v1285_v39 = vpop.permute.xlu0 %1284  ;;  %v1939_v21 = vsel %vm1933_vm10, %v1874_v23, %v1419_v29  ;;  %v1080_v13 = vpack.c.b16 %v1078_v59, %v1078_v59  ;;  %v1087_v15 = vrot.slane %v1085_v9, 1  ;;  %v5228_v59 = vld [vmem:[#allocation11_spill] sm:$0xff] }
 0x17f   :  { %2716 = vmatmul.msk.bf16.gmra.mxu0 %vm2022_vm11, %v1939_v21 }
 0x180   :  { %v1171_v21 = vrot.slane %v1080_v13, 1 }
 0x183   :  { %1144 = vrot.lane.b32.xlu2 %v5225_v14, %s2892_s22  ;;  %1204 = vrot.lane.b32.xlu1 %v3955_v46, %s2891_s21  ;;  %v1514_v14 = vsel %vm1478_vm3, %v4068_v4, %v3568_v31 }
 0x184   :  { %1184 = vrot.lane.b32.xlu0 %v3500_v51, %s2891_s21  ;;  %v1090_v51 = vshll.u32 %v1080_v13, 16  ;;  %v1579_v47 = vsel %vm1543_vm4, %v1514_v14, %v3908_v20 }
 0x185   :  { %v4062_v53 = vpop.permute.xlu2 %974  ;;  %v1379_v16 = vpop.permute.xlu1 %1378  ;;  %v1644_v18 = vsel %vm1608_vm5, %v1579_v47, %v3933_v8  ;;  %v1088_v8 = vor.u32 %v1087_v15, %v1083_v62 }
 0x186   :  { %v1061_v26 = vpop.permute.xlu0 %1060  ;;  %v1709_v56 = vsel %vm1673_vm6, %v1644_v18, %v3950_v10  ;;  %v1092_v61 = vrot.slane %v1090_v51, 1  ;;  %v4098_v10 = vld [vmem:[%s5059_s0 + $0x138] sm:$0xff] }
 0x187   :  { %v1774_v31 = vsel %vm1738_vm7, %v1709_v56, %v3970_v12  ;;  %v1528_v12 = vsel %vm1478_vm3, %v4098_v10, %v3648_v37 }
 0x188   :  { %v1839_v19 = vsel %vm1803_vm8, %v1774_v31, %v1285_v39  ;;  %v1593_v63 = vsel %vm1543_vm4, %v1528_v12, %v3978_v55  ;;  %v4111_v28 = vsel %vm392_vm0, %v1088_v8, %v1092_v61  ;;  %v1170_v39 = vrot.slane %v4054_v17, 1 }
 0x189   :  { %v1904_v57 = vsel %vm1868_vm9, %v1839_v19, %v1379_v16  ;;  %v1658_v23 = vsel %vm1608_vm5, %v1593_v63, %v1061_v26 }
 0x18a   :  { %v1723_v37 = vsel %vm1673_vm6, %v1658_v23, %v4002_v40  ;;  %v4134_v13 = vsel %vm841_vm1, %v1170_v39, %v1171_v21 }
 0x18b   :  { %1214 = vrot.lane.b32.xlu2 %v3983_v0, %s2891_s21  ;;  %1278 = vrot.lane.b32.xlu1 %v4054_v17, %s2890_s20 }
 0x18c   :  { %1258 = vrot.lane.b32.xlu0 %v4089_v41, %s2890_s20 }
 0x18d   :  { %v4093_v20 = vpop.permute.xlu2 %1048  ;;  %v1225_v5 = vpop.permute.xlu1 %1224 }
 0x18e   :  { %v1449_v44 = vpop.permute.xlu0 %1448  ;;  %v1788_v55 = vsel %vm1738_vm7, %v1723_v37, %v1225_v5 }
 0x18f   :  { %v1969_v29 = vsel %vm1933_vm10, %v1904_v57, %v1449_v44  ;;  %v1853_v40 = vsel %vm1803_vm8, %v1788_v55, %v4020_v32  ;;  %v4146_v32 = vld [vmem:[%s5059_s0 + $0x114] sm:$0xff]  ;;  %v4162_v44 = vld [vmem:[%s5059_s0 + $0x15c] sm:$0xff] }
 0x190   :  { %2731 = vmatmul.msk.bf16.vlgmr.msra.gmra.mxu2 %vm2022_vm11, %v1969_v29  ;;  %v5229_v57 = vld [vmem:[#allocation40_spill] sm:$0xff]  ;;  %v905_v37 = vrot.slane %v4146_v32, 1 }
 0x191   :  { %v5230_v55 = vld [vmem:[#allocation28_spill] sm:$0xff] }
 0x192   :  { %v906_v39 = vrot.slane %v5230_v55, 1 }
 0x193   :  { %990 = vrot.lane.b32.xlu2 %v3853_v22, %s2888_s19  ;;  %1372 = vrot.lane.b32.xlu1 %v4111_v28, %s2894_s24  ;;  %v4130_v22 = vld [vmem:[%s5061_s2] ss:$0 sm:$0xff] }
 0x194   :  { %1352 = vrot.lane.b32.xlu0 %v5228_v59, %s2894_s24  ;;  %v2100_v9 = vpop.f32.mrf.mxu0 }
 0x195   :  { %v4123_v16 = vpop.permute.xlu2 %1142  ;;  %v1463_v26 = vpop.permute.xlu1 %1462  ;;  %v2101_v51 = vadd.f32 %v4130_v22, %v2100_v9  ;;  %v4176_v9 = vld [vmem:[%s5059_s0 + $0x168] sm:$0xff] }
 0x196   :  { %v1393_v14 = vpop.permute.xlu0 %1392 }
 0x197   :  { %v1918_v62 = vsel %vm1868_vm9, %v1853_v40, %v1393_v14  ;;  %v2260_v56 = vmax.f32 %v2101_v51, 0.0  ;;  %v926_v40 = vrot.slane %v4176_v9, 1  ;;  %v5231_v14 = vld [vmem:[#allocation42_spill] sm:$0xff] }
 0x198   :  { %v1983_v15 = vsel %vm1933_vm10, %v1918_v62, %v1463_v26  ;;  %v927_v62 = vrot.slane %v5231_v14, 1 }
 0x199   :  { %2738 = vmatmul.msk.bf16.gmra.mxu3 %vm2022_vm11, %v1983_v15  ;;  %v2324_v19 = vsel %vm1933_vm10, %v2260_v56, 0.0 }
 0x19b   :  { %1442 = vrot.lane.b32.xlu2 %v4134_v13, %s2893_s23  ;;  %1422 = vrot.lane.b32.xlu1 %v3497_v11, %s2893_s23 }
 0x19c   :  { %1288 = vrot.lane.b32.xlu0 %v4146_v32, %s2890_s20  ;;  %v2102_v47 = vpop.f32.mrf.mxu0 }
 0x19d   :  { %v4150_v18 = vpop.permute.xlu2 %1212  ;;  %v2103_v31 = vadd.f32 %v4130_v22, %v2102_v47  ;;  %v1039_v8 = vpop.permute.xlu1 %1038  ;;  %v4187_v47 = vsel %vm841_vm1, %v926_v40, %v927_v62 }
 0x19e   :  { %v1019_v61 = vpop.permute.xlu0 %1018 }
 0x19f   :  { %v2261_v12 = vmax.f32 %v2103_v31, 0.0 }
 0x1a1   :  { %v2325_v5 = vsel %vm1933_vm10, %v2261_v12, 0.0 }
 0x1a2   :  { %v2326_v63 = vadd.f32 %v2325_v5, %v2324_v19  ;;  %v2845_v19 = vld [vmem:[%s5059_s0 + $0x9c] sm:$0xff] }
 0x1a3   :  { %1158 = vrot.lane.b32.xlu2 %v3447_v36, %s2892_s22  ;;  %1382 = vrot.lane.b32.xlu1 %v5229_v57, %s2894_s24  ;;  %v4171_v36 = vsel %vm841_vm1, %v905_v37, %v906_v39  ;;  %v1506_v5 = vsel %vm1478_vm3, %v2845_v19, %v3594_v2 }
 0x1a4   :  { %1064 = vrot.lane.b32.xlu0 %v4162_v44, %s2889_s27 }
 0x1a5   :  { %v4166_v23 = vpop.permute.xlu2 %988  ;;  %v1133_v29 = vpop.permute.xlu1 %1132 }
 0x1a6   :  { %v1113_v21 = vpop.permute.xlu0 %1112 }
 0x1ab   :  { %1302 = vrot.lane.b32.xlu2 %v4176_v9, %s2890_s20  ;;  %1228 = vrot.lane.b32.xlu1 %v3994_v43, %s2891_s21 }
 0x1ac   :  { %1452 = vrot.lane.b32.xlu0 %v4171_v36, %s2893_s23 }
 0x1ad   :  { %v1441_v26 = vpop.permute.xlu2 %1440  ;;  %v1203_v15 = vpop.permute.xlu1 %1202 }
 0x1ae   :  { %v1183_v51 = vpop.permute.xlu0 %1182 }
 0x1b3   :  { %968 = vrot.lane.b32.xlu2 %v3955_v46, %s2888_s19  ;;  %1466 = vrot.lane.b32.xlu1 %v4187_v47, %s2893_s23  ;;  %v1571_v46 = vsel %vm1543_vm4, %v1506_v5, %v4043_v38 }
 0x1b4   :  { %1396 = vrot.lane.b32.xlu0 %v3443_v48, %s2894_s24  ;;  %v1636_v37 = vsel %vm1608_vm5, %v1571_v46, %v1039_v8 }
 0x1b5   :  { %v4195_v56 = vpop.permute.xlu2 %1156  ;;  %v1277_v31 = vpop.permute.xlu1 %1276  ;;  %v1701_v55 = vsel %vm1673_vm6, %v1636_v37, %v1133_v29 }
 0x1b6   :  { %v1257_v12 = vpop.permute.xlu0 %1256  ;;  %v1766_v39 = vsel %vm1738_vm7, %v1701_v55, %v1203_v15  ;;  %v81_v55 = vld [vmem:[%s5059_s0 + $0xd4] sm:$0x1] }
 0x1b7   :  { %v1831_v2 = vsel %vm1803_vm8, %v1766_v39, %v1277_v31  ;;  %v1316_v39 = vunpack.c.l.b16 %v81_v55 }
 0x1bb   :  { %978 = vrot.lane.b32.xlu2 %v3983_v0, %s2888_s19  ;;  %1042 = vrot.lane.b32.xlu1 %v4054_v17, %s2889_s27  ;;  %v1486_v17 = vsel %vm1478_vm3, %v3733_v6, %v3558_v34 }
 0x1bc   :  { %1022 = vrot.lane.b32.xlu0 %v4089_v41, %s2889_s27  ;;  %v1551_v15 = vsel %vm1543_vm4, %v1486_v17, %v3644_v45 }
 0x1bd   :  { %v4213_v40 = vpop.permute.xlu2 %1300  ;;  %v2105_v38 = vpop.f32.mrf.mxu0  ;;  %v1616_v31 = vsel %vm1608_vm5, %v1551_v15, %v1019_v61 }
 0x1be   :  { %v1371_v14 = vpop.permute.xlu1 %1370  ;;  %v2106_v8 = vadd.f32 %v4130_v22, %v2105_v38  ;;  %v1351_v62 = vpop.permute.xlu0 %1350  ;;  %v1681_v5 = vsel %vm1673_vm6, %v1616_v31, %v1113_v21 }
 0x1bf   :  { %v1896_v0 = vsel %vm1868_vm9, %v1831_v2, %v1371_v14  ;;  %v1746_v37 = vsel %vm1738_vm7, %v1681_v5, %v1183_v51 }
 0x1c0   :  { %v1961_v29 = vsel %vm1933_vm10, %v1896_v0, %v1441_v26  ;;  %v2262_v19 = vmax.f32 %v2106_v8, 0.0  ;;  %v1811_v45 = vsel %vm1803_vm8, %v1746_v37, %v1257_v12  ;;  %v1318_v8 = vpack.c.b16 %v1316_v39, %v1316_v39  ;;  %v5232_v39 = vld [vmem:[#allocation9_spill] sm:$0xff] }
 0x1c1   :  { %2727 = vmatmul.msk.bf16.gmra.mxu1 %vm2022_vm11, %v1961_v29  ;;  %v1876_v61 = vsel %vm1868_vm9, %v1811_v45, %v1351_v62  ;;  %v4262_v29 = vld [vmem:[%s5059_s0 + $0xf0] sm:$0xff] }
 0x1c2   :  { %v2327_v46 = vsel %vm1933_vm10, %v2262_v19, 0.0  ;;  %v1328_v19 = vshll.u32 %v1318_v8, 16 }
 0x1c3   :  { %1052 = vrot.lane.b32.xlu2 %v4146_v32, %s2889_s27  ;;  %v2328_v34 = vadd.f32 %v2327_v46, %v2326_v63  ;;  %1136 = vrot.lane.b32.xlu1 %v4111_v28, %s2892_s22  ;;  %v4281_v46 = vld [vmem:[%s5059_s0 + $0x54] sm:$0xff] }
 0x1c4   :  { %1116 = vrot.lane.b32.xlu0 %v5228_v59, %s2892_s22  ;;  %v2781_v59 = vld [vmem:[%s5059_s0 + $0xcc] sm:$0xff]  ;;  %v1330_v37 = vrot.slane %v1328_v19, 1 }
 0x1c5   :  { %v4236_v6 = vpop.permute.xlu2 %966  ;;  %v2107_v21 = vpop.f32.mrf.mxu0  ;;  %v1323_v0 = vshll.u32 %v2781_v59, 16  ;;  %v1321_v15 = vshrl.u32 %v2781_v59, 16 }
 0x1c6   :  { %v1421_v26 = vpop.permute.xlu1 %1420  ;;  %v2108_v63 = vadd.f32 %v4130_v22, %v2107_v21  ;;  %v1287_v51 = vpop.permute.xlu0 %1286 }
 0x1c7   :  { %v1941_v28 = vsel %vm1933_vm10, %v1876_v61, %v1421_v26 }
 0x1c8   :  { %2717 = vmatmul.msk.bf16.gmra.mxu0 %vm2022_vm11, %v1941_v28  ;;  %v2263_v12 = vmax.f32 %v2108_v63, 0.0 }
 0x1ca   :  { %v2329_v2 = vsel %vm1933_vm10, %v2263_v12, 0.0  ;;  %v1409_v12 = vrot.slane %v1318_v8, 1 }
 0x1cb   :  { %1146 = vrot.lane.b32.xlu2 %v5229_v57, %s2892_s22  ;;  %v4251_v38 = vadd.f32 %v2329_v2, %v2328_v34  ;;  %1206 = vrot.lane.b32.xlu1 %v4134_v13, %s2891_s21  ;;  %v1516_v57 = vsel %vm1478_vm3, %v4262_v29, %v3622_v42  ;;  %v1325_v13 = vrot.slane %v1323_v0, 1 }
 0x1cc   :  { %1186 = vrot.lane.b32.xlu0 %v3497_v11, %s2891_s21  ;;  %v1581_v11 = vsel %vm1543_vm4, %v1516_v57, %v4062_v53 }
 0x1cd   :  { %v4257_v14 = vpop.permute.xlu2 %976  ;;  %v1646_v31 = vsel %vm1608_vm5, %v1581_v11, %v4093_v20  ;;  %v1326_v20 = vor.u32 %v1325_v13, %v1321_v15  ;;  %v5233_v13 = vld [vmem:[#allocation39_spill] sm:$0xff] }
 0x1ce   :  { %v1381_v62 = vpop.permute.xlu1 %1380  ;;  %v1063_v17 = vpop.permute.xlu0 %1062  ;;  %v1711_v5 = vsel %vm1673_vm6, %v1646_v31, %v4123_v16  ;;  %v2848_v16 = vld [vmem:[%s5059_s0 + $0x144] sm:$0xff] }
 0x1cf   :  { %v1776_v42 = vsel %vm1738_vm7, %v1711_v5, %v4150_v18  ;;  %v1530_v34 = vsel %vm1478_vm3, %v2848_v16, %v3646_v30  ;;  %v1331_v28 = vsel %vm392_vm0, %v1326_v20, %v1330_v37  ;;  %v5234_v5 = vld [vmem:[#allocation27_spill] sm:$0xff] }
 0x1d0   :  { %v1841_v18 = vsel %vm1803_vm8, %v1776_v42, %v1287_v51  ;;  %v1595_v61 = vsel %vm1543_vm4, %v1530_v34, %v4166_v23  ;;  %v1408_v23 = vrot.slane %v2781_v59, 1  ;;  %v909_v42 = vrot.slane %v5234_v5, 1  ;;  %v4353_v16 = vld [vmem:[%s5059_s0 + $0xd8] sm:$0xff] }
 0x1d1   :  { %v1906_v21 = vsel %vm1868_vm9, %v1841_v18, %v1381_v62  ;;  %v1660_v55 = vsel %vm1608_vm5, %v1595_v61, %v1063_v17  ;;  %v890_v34 = vrot.slane %v4353_v16, 1  ;;  %v5235_v18 = vld [vmem:[#allocation17_spill] sm:$0xff] }
 0x1d2   :  { %v1725_v30 = vsel %vm1673_vm6, %v1660_v55, %v4195_v56 }
 0x1d3   :  { %1216 = vrot.lane.b32.xlu2 %v4171_v36, %s2891_s21  ;;  %1280 = vrot.lane.b32.xlu1 %v2781_v59, %s2890_s20  ;;  %v4322_v59 = vld [vmem:[%s5059_s0 + $0x120] sm:$0xff] }
 0x1d4   :  { %1260 = vrot.lane.b32.xlu0 %v4281_v46, %s2890_s20  ;;  %v908_v31 = vrot.slane %v4322_v59, 1 }
 0x1d5   :  { %v4285_v53 = vpop.permute.xlu2 %1050 }
 0x1d6   :  { %v1227_v45 = vpop.permute.xlu1 %1226  ;;  %v1451_v26 = vpop.permute.xlu0 %1450  ;;  %v4339_v37 = vsel %vm841_vm1, %v908_v31, %v909_v42 }
 0x1d7   :  { %v1971_v63 = vsel %vm1933_vm10, %v1906_v21, %v1451_v26  ;;  %v1790_v51 = vsel %vm1738_vm7, %v1725_v30, %v1227_v45  ;;  %v891_v45 = vrot.slane %v5235_v18, 1  ;;  %v5236_v26 = vld [vmem:[#allocation41_spill] sm:$0xff] }
 0x1d8   :  { %2732 = vmatmul.msk.bf16.gmra.mxu2 %vm2022_vm11, %v1971_v63  ;;  %v1855_v62 = vsel %vm1803_vm8, %v1790_v51, %v4213_v40  ;;  %v930_v55 = vrot.slane %v5236_v26, 1 }
 0x1d9   :  { %v892_v30 = vsel %vm841_vm1, %v890_v34, %v891_v45 }
 0x1db   :  { %992 = vrot.lane.b32.xlu2 %v3994_v43, %s2888_s19  ;;  %1374 = vrot.lane.b32.xlu1 %v1331_v28, %s2894_s24  ;;  %v1410_v43 = vsel %vm841_vm1, %v1408_v23, %v1409_v12 }
 0x1dc   :  { %1354 = vrot.lane.b32.xlu0 %v5232_v39, %s2894_s24 }
 0x1dd   :  { %v4308_v2 = vpop.permute.xlu2 %1144 }
 0x1de   :  { %v1465_v0 = vpop.permute.xlu1 %1464  ;;  %v1395_v17 = vpop.permute.xlu0 %1394 }
 0x1df   :  { %v1920_v56 = vsel %vm1868_vm9, %v1855_v62, %v1395_v17 }
 0x1e0   :  { %v1985_v57 = vsel %vm1933_vm10, %v1920_v56, %v1465_v0 }
 0x1e1   :  { %2739 = vmatmul.msk.bf16.gmra.mxu3 %vm2022_vm11, %v1985_v57 }
 0x1e3   :  { %1444 = vrot.lane.b32.xlu2 %v1410_v43, %s2893_s23  ;;  %1424 = vrot.lane.b32.xlu1 %v3521_v52, %s2893_s23  ;;  %v1508_v43 = vsel %vm1478_vm3, %v3866_v49, %v3556_v54 }
 0x1e4   :  { %1290 = vrot.lane.b32.xlu0 %v4322_v59, %s2890_s20  ;;  %v1573_v57 = vsel %vm1543_vm4, %v1508_v43, %v4236_v6 }
 0x1e5   :  { %v4326_v40 = vpop.permute.xlu2 %1214 }
 0x1e6   :  { %v1041_v8 = vpop.permute.xlu1 %1040  ;;  %v1021_v15 = vpop.permute.xlu0 %1020 }
 0x1e7   :  { %v1638_v5 = vsel %vm1608_vm5, %v1573_v57, %v1041_v8 }
 0x1eb   :  { %1160 = vrot.lane.b32.xlu2 %v3443_v48, %s2892_s22  ;;  %1384 = vrot.lane.b32.xlu1 %v5233_v13, %s2894_s24  ;;  %v4344_v48 = vld [vmem:[%s5059_s0 + $0x174] sm:$0xff] }
 0x1ec   :  { %1066 = vrot.lane.b32.xlu0 %v4176_v9, %s2889_s27  ;;  %v929_v21 = vrot.slane %v4344_v48, 1 }
 0x1ed   :  { %v4334_v19 = vpop.permute.xlu2 %990 }
 0x1ee   :  { %v1135_v11 = vpop.permute.xlu1 %1134  ;;  %v1115_v20 = vpop.permute.xlu0 %1114  ;;  %v4363_v51 = vsel %vm841_vm1, %v929_v21, %v930_v55 }
 0x1ef   :  { %v1703_v34 = vsel %vm1673_vm6, %v1638_v5, %v1135_v11 }
 0x1f3   :  { %1304 = vrot.lane.b32.xlu2 %v4344_v48, %s2890_s20  ;;  %1230 = vrot.lane.b32.xlu1 %v4187_v47, %s2891_s21 }
 0x1f4   :  { %1454 = vrot.lane.b32.xlu0 %v4339_v37, %s2893_s23 }
 0x1f5   :  { %v1443_v61 = vpop.permute.xlu2 %1442 }
 0x1f6   :  { %v1205_v63 = vpop.permute.xlu1 %1204  ;;  %v1185_v28 = vpop.permute.xlu0 %1184 }
 0x1f7   :  { %v1768_v18 = vsel %vm1738_vm7, %v1703_v34, %v1205_v63 }
 0x1fb   :  { %970 = vrot.lane.b32.xlu2 %v892_v30, %s2888_s19  ;;  %1468 = vrot.lane.b32.xlu1 %v4363_v51, %s2893_s23 }
 0x1fc   :  { %1398 = vrot.lane.b32.xlu0 %v3440_v25, %s2894_s24  ;;  %v2110_v23 = vpop.f32.mrf.mxu0 }
 0x1fd   :  { %v4370_v12 = vpop.permute.xlu2 %1158  ;;  %v2111_v0 = vadd.f32 %v4130_v22, %v2110_v23 }
 0x1fe   :  { %v1279_v62 = vpop.permute.xlu1 %1278  ;;  %v1259_v17 = vpop.permute.xlu0 %1258 }
 0x1ff   :  { %v2264_v56 = vmax.f32 %v2111_v0, 0.0  ;;  %v1833_v6 = vsel %vm1803_vm8, %v1768_v18, %v1279_v62 }
 0x201   :  { %v2331_v31 = vsel %vm1933_vm10, %v2264_v56, 0.0  ;;  %v2852_v56 = vld [vmem:[%s5059_s0 + $0xfc] sm:$0xff] }
 0x202   :  { %v2332_v42 = vadd.f32 %v2331_v31, %v4251_v38  ;;  %v1518_v43 = vsel %vm1478_vm3, %v2852_v56, %v3620_v33  ;;  %v4447_v33 = vld [vmem:[%s5059_s0 + $0x60] sm:$0xff] }
 0x203   :  { %980 = vrot.lane.b32.xlu2 %v4171_v36, %s2888_s19  ;;  %1044 = vrot.lane.b32.xlu1 %v4068_v4, %s2889_s27  ;;  %v1488_v4 = vsel %vm1478_vm3, %v3778_v3, %v3490_v60  ;;  %v5237_v3 = vld [vmem:[#allocation24_spill] sm:$0xff] }
 0x204   :  { %1024 = vrot.lane.b32.xlu0 %v4281_v46, %s2889_s27  ;;  %v2112_v54 = vpop.f32.mrf.mxu0  ;;  %v1553_v26 = vsel %vm1543_vm4, %v1488_v4, %v3721_v58 }
 0x205   :  { %v4389_v49 = vpop.permute.xlu2 %1302  ;;  %v2113_v38 = vadd.f32 %v4130_v22, %v2112_v54  ;;  %v1618_v55 = vsel %vm1608_vm5, %v1553_v26, %v1021_v15 }
 0x206   :  { %v1373_v8 = vpop.permute.xlu1 %1372  ;;  %v1353_v45 = vpop.permute.xlu0 %1352  ;;  %v1683_v30 = vsel %vm1673_vm6, %v1618_v55, %v1115_v20 }
 0x207   :  { %v1898_v36 = vsel %vm1868_vm9, %v1833_v6, %v1373_v8  ;;  %v2265_v11 = vmax.f32 %v2113_v38, 0.0  ;;  %v1748_v60 = vsel %vm1738_vm7, %v1683_v30, %v1185_v28  ;;  %v5238_v6 = vld [vmem:[#allocation33_spill] sm:$0xff]  ;;  %v866_v8 = vrot.slane %v4447_v33, 1 }
 0x208   :  { %v1963_v21 = vsel %vm1933_vm10, %v1898_v36, %v1443_v61  ;;  %v1813_v58 = vsel %vm1803_vm8, %v1748_v60, %v1259_v17  ;;  %v5240_v36 = vld [vmem:[#allocation7_spill] sm:$0xff]  ;;  %v5241_v60 = vld [vmem:[#allocation38_spill] sm:$0xff] }
 0x209   :  { %2728 = vmatmul.msk.bf16.gmra.mxu1 %vm2022_vm11, %v1963_v21  ;;  %v2333_v63 = vsel %vm1933_vm10, %v2265_v11, 0.0  ;;  %v1878_v61 = vsel %vm1868_vm9, %v1813_v58, %v1353_v45  ;;  %v867_v45 = vrot.slane %v5240_v36, 1 }
 0x20a   :  { %v4404_v23 = vadd.f32 %v2333_v63, %v2332_v42 }
 0x20b   :  { %1054 = vrot.lane.b32.xlu2 %v4322_v59, %s2889_s27  ;;  %1138 = vrot.lane.b32.xlu1 %v5237_v3, %s2892_s22  ;;  %v4483_v26 = vsel %vm841_vm1, %v866_v8, %v867_v45  ;;  %v5246_v8 = vld [vmem:[#allocation49_spill] sm:$0xff] }
 0x20c   :  { %1118 = vrot.lane.b32.xlu0 %v5232_v39, %s2892_s22  ;;  %v1490_v36 = vsel %vm1478_vm3, %v3929_v35, %v5246_v8 }
 0x20d   :  { %v4414_v15 = vpop.permute.xlu2 %968 }
 0x20e   :  { %v1423_v20 = vpop.permute.xlu1 %1422  ;;  %v1289_v0 = vpop.permute.xlu0 %1288 }
 0x20f   :  { %v1943_v62 = vsel %vm1933_vm10, %v1878_v61, %v1423_v20  ;;  %v4507_v61 = vld [vmem:[%s5059_s0 + $0x180] sm:$0xff] }
 0x210   :  { %2718 = vmatmul.msk.bf16.gmra.mxu0 %vm2022_vm11, %v1943_v62  ;;  %v5243_v62 = vld [vmem:[#allocation46_spill] sm:$0xff] }
 0x213   :  { %1148 = vrot.lane.b32.xlu2 %v5233_v13, %s2892_s22  ;;  %1208 = vrot.lane.b32.xlu1 %v3724_v24, %s2891_s21  ;;  %v1583_v13 = vsel %vm1543_vm4, %v1518_v43, %v4257_v14 }
 0x214   :  { %1188 = vrot.lane.b32.xlu0 %v3521_v52, %s2891_s21  ;;  %v1648_v24 = vsel %vm1608_vm5, %v1583_v13, %v4285_v53  ;;  %v2854_v53 = vld [vmem:[%s5059_s0 + $0x150] sm:$0xff]  ;;  %v5244_v13 = vld [vmem:[#allocation48_spill] sm:$0xff] }
 0x215   :  { %v4425_v39 = vpop.permute.xlu2 %978  ;;  %v1713_v52 = vsel %vm1673_vm6, %v1648_v24, %v4308_v2 }
 0x216   :  { %v1383_v28 = vpop.permute.xlu1 %1382  ;;  %v1065_v17 = vpop.permute.xlu0 %1064  ;;  %v1778_v57 = vsel %vm1738_vm7, %v1713_v52, %v4326_v40 }
 0x217   :  { %v1843_v2 = vsel %vm1803_vm8, %v1778_v57, %v1289_v0  ;;  %v932_v0 = vrot.slane %v4507_v61, 1 }
 0x218   :  { %v1908_v5 = vsel %vm1868_vm9, %v1843_v2, %v1383_v28  ;;  %v933_v28 = vrot.slane %v5243_v62, 1  ;;  %v5249_v62 = vld [vmem:[#allocation55_spill] sm:$0xff] }
 0x21a   :  { %v4518_v43 = vsel %vm841_vm1, %v932_v0, %v933_v28  ;;  %v1520_v28 = vsel %vm1478_vm3, %v3966_v1, %v5249_v62 }
 0x21b   :  { %1218 = vrot.lane.b32.xlu2 %v4339_v37, %s2891_s21  ;;  %1282 = vrot.lane.b32.xlu1 %v4262_v29, %s2890_s20  ;;  %v1532_v29 = vsel %vm1478_vm3, %v2854_v53, %v3607_v27 }
 0x21c   :  { %1262 = vrot.lane.b32.xlu0 %v4447_v33, %s2890_s20  ;;  %v1597_v31 = vsel %vm1543_vm4, %v1532_v29, %v4334_v19  ;;  %v5239_v19 = vld [vmem:[#allocation8_spill] sm:$0xff] }
 0x21d   :  { %v4451_v14 = vpop.permute.xlu2 %1052  ;;  %v1662_v34 = vsel %vm1608_vm5, %v1597_v31, %v1065_v17 }
 0x21e   :  { %v1229_v40 = vpop.permute.xlu1 %1228  ;;  %v1453_v42 = vpop.permute.xlu0 %1452  ;;  %v1727_v54 = vsel %vm1673_vm6, %v1662_v34, %v4370_v12 }
 0x21f   :  { %v1973_v18 = vsel %vm1933_vm10, %v1908_v5, %v1453_v42  ;;  %v1792_v27 = vsel %vm1738_vm7, %v1727_v54, %v1229_v40  ;;  %v5245_v40 = vld [vmem:[#allocation57_spill] sm:$0xff] }
 0x220   :  { %2733 = vmatmul.msk.bf16.gmra.mxu2 %vm2022_vm11, %v1973_v18  ;;  %v1857_v12 = vsel %vm1803_vm8, %v1792_v27, %v4389_v49  ;;  %v2855_v49 = vld [vmem:[%s5059_s0 + $0x12c] sm:$0xff]  ;;  %v1510_v31 = vsel %vm1478_vm3, %v3922_v7, %v5245_v40 }
 0x221   :  { %v1575_v5 = vsel %vm1543_vm4, %v1510_v31, %v4414_v15 }
 0x223   :  { %994 = vrot.lane.b32.xlu2 %v4187_v47, %s2888_s19  ;;  %1376 = vrot.lane.b32.xlu1 %v5238_v6, %s2894_s24 }
 0x224   :  { %1356 = vrot.lane.b32.xlu0 %v5239_v19, %s2894_s24 }
 0x225   :  { %v4474_v38 = vpop.permute.xlu2 %1146 }
 0x226   :  { %v1467_v4 = vpop.permute.xlu1 %1466  ;;  %v1397_v11 = vpop.permute.xlu0 %1396 }
 0x227   :  { %v1922_v47 = vsel %vm1868_vm9, %v1857_v12, %v1397_v11  ;;  %v2857_v11 = vld [vmem:[%s5059_s0 + $0x6c] sm:$0xff] }
 0x228   :  { %v1987_v21 = vsel %vm1933_vm10, %v1922_v47, %v1467_v4  ;;  %v5247_v4 = vld [vmem:[#allocation32_spill] sm:$0xff] }
 0x229   :  { %2740 = vmatmul.msk.bf16.gmra.mxu3 %vm2022_vm11, %v1987_v21 }
 0x22b   :  { %1446 = vrot.lane.b32.xlu2 %v3767_v50, %s2893_s23  ;;  %1426 = vrot.lane.b32.xlu1 %v4483_v26, %s2893_s23 }
 0x22c   :  { %1292 = vrot.lane.b32.xlu0 %v2855_v49, %s2890_s20 }
 0x22d   :  { %v4494_v55 = vpop.permute.xlu2 %1216 }
 0x22e   :  { %v1043_v63 = vpop.permute.xlu1 %1042  ;;  %v1023_v30 = vpop.permute.xlu0 %1022 }
 0x22f   :  { %v1640_v34 = vsel %vm1608_vm5, %v1575_v5, %v1043_v63 }
 0x233   :  { %1162 = vrot.lane.b32.xlu2 %v3440_v25, %s2892_s22  ;;  %1386 = vrot.lane.b32.xlu1 %v5241_v60, %s2894_s24  ;;  %v5242_v25 = vld [vmem:[#allocation61_spill] sm:$0xff] }
 0x234   :  { %1068 = vrot.lane.b32.xlu0 %v4344_v48, %s2889_s27 }
 0x235   :  { %v4502_v50 = vpop.permute.xlu2 %992 }
 0x236   :  { %v1137_v3 = vpop.permute.xlu1 %1136  ;;  %v1117_v58 = vpop.permute.xlu0 %1116 }
 0x23b   :  { %1306 = vrot.lane.b32.xlu2 %v4507_v61, %s2890_s20  ;;  %1232 = vrot.lane.b32.xlu1 %v4363_v51, %s2891_s21 }
 0x23c   :  { %1456 = vrot.lane.b32.xlu0 %v5242_v25, %s2893_s23 }
 0x23d   :  { %v1445_v20 = vpop.permute.xlu2 %1444 }
 0x23e   :  { %v1207_v17 = vpop.permute.xlu1 %1206  ;;  %v1187_v56 = vpop.permute.xlu0 %1186 }
 0x243   :  { %1026 = vrot.lane.b32.xlu2 %v4447_v33, %s2889_s27  ;;  %1470 = vrot.lane.b32.xlu1 %v4518_v43, %s2893_s23 }
 0x244   :  { %1400 = vrot.lane.b32.xlu0 %v5244_v13, %s2894_s24 }
 0x245   :  { %v2115_v24 = vpop.f32.mrf.mxu0  ;;  %v4526_v52 = vpop.permute.xlu2 %1160 }
 0x246   :  { %v2116_v57 = vadd.f32 %v4130_v22, %v2115_v24  ;;  %v1281_v53 = vpop.permute.xlu1 %1280  ;;  %v1261_v29 = vpop.permute.xlu0 %1260  ;;  %v1705_v22 = vsel %vm1673_vm6, %v1640_v34, %v1137_v3 }
 0x247   :  { %v1770_v54 = vsel %vm1738_vm7, %v1705_v22, %v1207_v17  ;;  %v1585_v17 = vsel %vm1543_vm4, %v1520_v28, %v4425_v39  ;;  %v5251_v39 = vld [vmem:[#allocation64_spill] sm:$0xff] }
 0x248   :  { %v2266_v2 = vmax.f32 %v2116_v57, 0.0  ;;  %v1835_v15 = vsel %vm1803_vm8, %v1770_v54, %v1281_v53 }
 0x24a   :  { %v2335_v42 = vsel %vm1933_vm10, %v2266_v2, 0.0 }
 0x24b   :  { %v4537_v18 = vadd.f32 %v2335_v42, %v4404_v23  ;;  %1056 = vrot.lane.b32.xlu2 %v2855_v49, %s2889_s27  ;;  %1120 = vrot.lane.b32.xlu1 %v5239_v19, %s2892_s22  ;;  %v1555_v19 = vsel %vm1543_vm4, %v1490_v36, %v5247_v4 }
 0x24c   :  { %982 = vrot.lane.b32.xlu0 %v4339_v37, %s2888_s19  ;;  %v1620_v37 = vsel %vm1608_vm5, %v1555_v19, %v1023_v30 }
 0x24d   :  { %v1305_v7 = vpop.permute.xlu2 %1304  ;;  %v1685_v12 = vsel %vm1673_vm6, %v1620_v37, %v1117_v58 }
 0x24e   :  { %v1375_v27 = vpop.permute.xlu1 %1374  ;;  %v1355_v23 = vpop.permute.xlu0 %1354  ;;  %v1750_v47 = vsel %vm1738_vm7, %v1685_v12, %v1187_v56  ;;  %v5250_v56 = vld [vmem:[#allocation50_spill] sm:$0xff]  ;;  %v2859_v12 = vld [vmem:[%s5059_s0 + $0x78] sm:$0xff] }
 0x24f   :  { %v1900_v6 = vsel %vm1868_vm9, %v1835_v15, %v1375_v27  ;;  %v1815_v35 = vsel %vm1803_vm8, %v1750_v47, %v1261_v29  ;;  %v5254_v15 = vld [vmem:[#allocation47_spill] sm:$0xff]  ;;  %v132_v47 = vld [vmem:[%s5059_s0 + $0x1a0] sm:$0x1] }
 0x250   :  { %v1965_v45 = vsel %vm1933_vm10, %v1900_v6, %v1445_v20  ;;  %v1880_v49 = vsel %vm1868_vm9, %v1815_v35, %v1355_v23  ;;  %v5255_v23 = vld [vmem:[#allocation45_spill] sm:$0xff] }
 0x251   :  { %2729 = vmatmul.msk.bf16.gmra.mxu1 %vm2022_vm11, %v1965_v45  ;;  %v936_v8 = vrot.slane %v5255_v23, 1 }
 0x253   :  { %1264 = vrot.lane.b32.xlu2 %v2857_v11, %s2890_s20  ;;  %1150 = vrot.lane.b32.xlu1 %v5241_v60, %s2892_s22  ;;  %v5248_v60 = vld [vmem:[#allocation15_spill] sm:$0xff] }
 0x254   :  { %1190 = vrot.lane.b32.xlu0 %v4483_v26, %s2891_s21 }
 0x255   :  { %v4567_v21 = vpop.permute.xlu2 %970 }
 0x256   :  { %v1425_v63 = vpop.permute.xlu1 %1424  ;;  %v1291_v30 = vpop.permute.xlu0 %1290 }
 0x257   :  { %v1945_v3 = vsel %vm1933_vm10, %v1880_v49, %v1425_v63  ;;  %v2798_v49 = vld [vmem:[%s5059_s0 + $0x198] sm:$0xff]  ;;  %v1079_v63 = vunpack.c.l.b16 %v132_v47 }
 0x258   :  { %2719 = vmatmul.msk.bf16.gmra.mxu0 %vm2022_vm11, %v1945_v3  ;;  %v5257_v3 = vld [vmem:[#allocation14_spill] sm:$0xff] }
 0x25b   :  { %996 = vrot.lane.b32.xlu2 %v4363_v51, %s2888_s19  ;;  %1358 = vrot.lane.b32.xlu1 %v5248_v60, %s2894_s24  ;;  %v1650_v51 = vsel %vm1608_vm5, %v1585_v17, %v4451_v14  ;;  %v1534_v14 = vsel %vm1478_vm3, %v4162_v44, %v5251_v39  ;;  %v5252_v44 = vld [vmem:[#allocation65_spill] sm:$0xff]  ;;  %v5258_v17 = vld [vmem:[#allocation56_spill] sm:$0xff] }
 0x25c   :  { %1220 = vrot.lane.b32.xlu0 %v5242_v25, %s2891_s21  ;;  %v1715_v25 = vsel %vm1673_vm6, %v1650_v51, %v4474_v38  ;;  %v1599_v38 = vsel %vm1543_vm4, %v1534_v14, %v4502_v50  ;;  %v5253_v50 = vld [vmem:[#allocation44_spill] sm:$0xff]  ;;  %v1512_v51 = vsel %vm1478_vm3, %v4353_v16, %v5258_v17 }
 0x25d   :  { %v4578_v58 = vpop.permute.xlu2 %980  ;;  %v1780_v24 = vsel %vm1738_vm7, %v1715_v25, %v4494_v55  ;;  %v1095_v25 = vshrl.u32 %v2798_v49, 16  ;;  %v1577_v39 = vsel %vm1543_vm4, %v1512_v51, %v4567_v21  ;;  %v5261_v17 = vld [vmem:[#allocation60_spill] sm:$0xff] }
 0x25e   :  { %v1385_v20 = vpop.permute.xlu1 %1384  ;;  %v1067_v0 = vpop.permute.xlu0 %1066  ;;  %v1845_v57 = vsel %vm1803_vm8, %v1780_v24, %v1291_v30  ;;  %v5256_v30 = vld [vmem:[#allocation52_spill] sm:$0xff]  ;;  %v1522_v51 = vsel %vm1478_vm3, %v4146_v32, %v5261_v17  ;;  %v5262_v32 = vld [vmem:[#allocation63_spill] sm:$0xff] }
 0x25f   :  { %v1910_v29 = vsel %vm1868_vm9, %v1845_v57, %v1385_v20  ;;  %v1664_v55 = vsel %vm1608_vm5, %v1599_v38, %v1067_v0  ;;  %v1097_v20 = vshll.u32 %v2798_v49, 16 }
 0x263   :  { %1070 = vrot.lane.b32.xlu2 %v4507_v61, %s2889_s27  ;;  %1428 = vrot.lane.b32.xlu1 %v5250_v56, %s2893_s23 }
 0x264   :  { %1294 = vrot.lane.b32.xlu0 %v4098_v10, %s2890_s20  ;;  %v1729_v10 = vsel %vm1673_vm6, %v1664_v55, %v4526_v52 }
 0x265   :  { %v4597_v1 = vpop.permute.xlu2 %1054 }
 0x266   :  { %v1231_v53 = vpop.permute.xlu1 %1230  ;;  %v1455_v2 = vpop.permute.xlu0 %1454 }
 0x267   :  { %v1975_v40 = vsel %vm1933_vm10, %v1910_v29, %v1455_v2  ;;  %v1794_v31 = vsel %vm1738_vm7, %v1729_v10, %v1231_v53  ;;  %v1173_v29 = vrot.slane %v2798_v49, 1  ;;  %v5259_v10 = vld [vmem:[#allocation54_spill] sm:$0xff] }
 0x268   :  { %2734 = vmatmul.msk.bf16.gmra.mxu2 %vm2022_vm11, %v1975_v40  ;;  %v1859_v34 = vsel %vm1803_vm8, %v1794_v31, %v1305_v7 }
 0x26b   :  { %1458 = vrot.lane.b32.xlu2 %v5252_v44, %s2893_s23  ;;  %1164 = vrot.lane.b32.xlu1 %v5244_v13, %s2892_s22  ;;  %v4629_v13 = vld [vmem:[%s5059_s0 + $0x18c] sm:$0xff]  ;;  %v1492_v44 = vsel %vm1478_vm3, %v4089_v41, %v5259_v10 }
 0x26c   :  { %1388 = vrot.lane.b32.xlu0 %v5253_v50, %s2894_s24  ;;  %v935_v6 = vrot.slane %v4629_v13, 1  ;;  %v5260_v50 = vld [vmem:[#allocation62_spill] sm:$0xff] }
 0x26d   :  { %v4618_v5 = vpop.permute.xlu2 %1148 }
 0x26e   :  { %v1469_v42 = vpop.permute.xlu1 %1468  ;;  %v1399_v22 = vpop.permute.xlu0 %1398  ;;  %v4640_v45 = vsel %vm841_vm1, %v935_v6, %v936_v8 }
 0x26f   :  { %v1924_v54 = vsel %vm1868_vm9, %v1859_v34, %v1399_v22 }
 0x270   :  { %v1989_v52 = vsel %vm1933_vm10, %v1924_v54, %v1469_v42  ;;  %v1557_v42 = vsel %vm1543_vm4, %v1492_v44, %v5260_v50  ;;  %v135_v54 = vld [vmem:[%s5059_s0 + $0x1ac] sm:$0x1] }
 0x271   :  { %2741 = vmatmul.msk.bf16.gmra.mxu3 %vm2022_vm11, %v1989_v52  ;;  %v1317_v6 = vunpack.c.l.b16 %v135_v54 }
 0x273   :  { %1402 = vrot.lane.b32.xlu2 %v5254_v15, %s2894_s24  ;;  %1308 = vrot.lane.b32.xlu1 %v4629_v13, %s2890_s20 }
 0x274   :  { %1234 = vrot.lane.b32.xlu0 %v4518_v43, %s2891_s21 }
 0x275   :  { %v4635_v7 = vpop.permute.xlu2 %1218 }
 0x276   :  { %v1045_v27 = vpop.permute.xlu1 %1044  ;;  %v1025_v36 = vpop.permute.xlu0 %1024 }
 0x277   :  { %v1622_v52 = vsel %vm1608_vm5, %v1557_v42, %v1025_v36  ;;  %v2799_v36 = vld [vmem:[%s5059_s0 + $0x1a4] sm:$0xff] }
 0x278   :  { %v1333_v47 = vshrl.u32 %v2799_v36, 16 }
 0x27b   :  { %1028 = vrot.lane.b32.xlu2 %v2857_v11, %s2889_s27  ;;  %954 = vrot.lane.b32.xlu1 %v4483_v26, %s2888_s19 }
 0x27c   :  { %1472 = vrot.lane.b32.xlu0 %v4640_v45, %s2893_s23 }
 0x27d   :  { %v4647_v4 = vpop.permute.xlu2 %994 }
 0x27e   :  { %v1139_v19 = vpop.permute.xlu1 %1138  ;;  %v1119_v37 = vpop.permute.xlu0 %1118 }
 0x27f   :  { %v1687_v41 = vsel %vm1673_vm6, %v1622_v52, %v1119_v37 }
 0x283   :  { %1266 = vrot.lane.b32.xlu2 %v2859_v12, %s2890_s20  ;;  %1192 = vrot.lane.b32.xlu1 %v5250_v56, %s2891_s21  ;;  %v1099_v56 = vrot.slane %v1097_v20, 1 }
 0x284   :  { %1122 = vrot.lane.b32.xlu0 %v5248_v60, %s2892_s22  ;;  %v1081_v60 = vpack.c.b16 %v1079_v63, %v1079_v63 }
 0x285   :  { %v1447_v26 = vpop.permute.xlu2 %1446  ;;  %v1100_v16 = vor.u32 %v1099_v56, %v1095_v25  ;;  %v1587_v25 = vsel %vm1543_vm4, %v1522_v51, %v4578_v58  ;;  %v1536_v58 = vsel %vm1478_vm3, %v4176_v9, %v5262_v32 }
 0x286   :  { %v1209_v11 = vpop.permute.xlu1 %1208  ;;  %v1189_v35 = vpop.permute.xlu0 %1188  ;;  %v1102_v24 = vshll.u32 %v1081_v60, 16  ;;  %v1174_v2 = vrot.slane %v1081_v60, 1  ;;  %v1652_v56 = vsel %vm1608_vm5, %v1587_v25, %v4597_v1 }
 0x288   :  { %v1104_v53 = vrot.slane %v1102_v24, 1 }
 0x28a   :  { %v1105_v22 = vsel %vm392_vm0, %v1100_v16, %v1104_v53 }
 0x28b   :  { %1430 = vrot.lane.b32.xlu2 %v5256_v30, %s2893_s23  ;;  %998 = vrot.lane.b32.xlu1 %v4518_v43, %s2888_s19  ;;  %v1642_v43 = vsel %vm1608_vm5, %v1577_v39, %v1045_v27  ;;  %v1752_v27 = vsel %vm1738_vm7, %v1687_v41, %v1189_v35  ;;  %v5263_v41 = vld [vmem:[#allocation53_spill] sm:$0xff] }
 0x28c   :  { %1360 = vrot.lane.b32.xlu0 %v5257_v3, %s2894_s24  ;;  %v1707_v14 = vsel %vm1673_vm6, %v1642_v43, %v1139_v19  ;;  %v1411_v43 = vrot.slane %v2799_v36, 1 }
 0x28d   :  { %v4669_v62 = vpop.permute.xlu2 %1162  ;;  %v1772_v57 = vsel %vm1738_vm7, %v1707_v14, %v1209_v11  ;;  %v1335_v11 = vshll.u32 %v2799_v36, 16 }
 0x28e   :  { %v1283_v0 = vpop.permute.xlu1 %1282  ;;  %v1263_v28 = vpop.permute.xlu0 %1262 }
 0x28f   :  { %v1837_v38 = vsel %vm1803_vm8, %v1772_v57, %v1283_v0  ;;  %v1817_v23 = vsel %vm1803_vm8, %v1752_v27, %v1263_v28  ;;  %v1337_v35 = vrot.slane %v1335_v11, 1 }
 0x291   :  { %v1338_v3 = vor.u32 %v1337_v35, %v1333_v47 }
 0x293   :  { %1236 = vrot.lane.b32.xlu2 %v4640_v45, %s2891_s21  ;;  %1166 = vrot.lane.b32.xlu1 %v5254_v15, %s2892_s22  ;;  %v1175_v15 = vsel %vm841_vm1, %v1173_v29, %v1174_v2 }
 0x294   :  { %1072 = vrot.lane.b32.xlu0 %v4629_v13, %s2889_s27 }
 0x295   :  { %v1307_v34 = vpop.permute.xlu2 %1306 }
 0x296   :  { %v1377_v21 = vpop.permute.xlu1 %1376  ;;  %v1357_v40 = vpop.permute.xlu0 %1356 }
 0x297   :  { %v1902_v55 = vsel %vm1868_vm9, %v1837_v38, %v1377_v21  ;;  %v1882_v8 = vsel %vm1868_vm9, %v1817_v23, %v1357_v40  ;;  %v4744_v21 = vpop.f32.mrf.mxu1 }
 0x298   :  { %v1967_v31 = vsel %vm1933_vm10, %v1902_v55, %v1447_v26  ;;  %v1319_v26 = vpack.c.b16 %v1317_v6, %v1317_v6  ;;  %v5264_v6 = vld [vmem:[#allocation36_spill] sm:$0xff] }
 0x299   :  { %2730 = vmatmul.msk.bf16.gmra.mxu1 %vm2022_vm11, %v1967_v31 }
 0x29a   :  { %v1340_v63 = vshll.u32 %v1319_v26, 16  ;;  %v1412_v14 = vrot.slane %v1319_v26, 1 }
 0x29b   :  { %1474 = vrot.lane.b32.xlu2 %v1175_v15, %s2893_s23  ;;  %1404 = vrot.lane.b32.xlu1 %v1105_v22, %s2894_s24 }
 0x29c   :  { %1310 = vrot.lane.b32.xlu0 %v2798_v49, %s2890_s20  ;;  %v1342_v60 = vrot.slane %v1340_v63, 1  ;;  %v1413_v38 = vsel %vm841_vm1, %v1411_v43, %v1412_v14 }
 0x29d   :  { %v1027_v30 = vpop.permute.xlu2 %1026 }
 0x29e   :  { %v1427_v19 = vpop.permute.xlu1 %1426  ;;  %v1293_v12 = vpop.permute.xlu0 %1292  ;;  %v1343_v28 = vsel %vm392_vm0, %v1338_v3, %v1342_v60  ;;  %v5265_v3 = vld [vmem:[#allocation59_spill] sm:$0xff] }
 0x29f   :  { %v1947_v37 = vsel %vm1933_vm10, %v1882_v8, %v1427_v19  ;;  %v4752_v31 = vpop.f32.mrf.mxu1  ;;  %v1524_v60 = vsel %vm1478_vm3, %v4322_v59, %v5265_v3 }
 0x2a0   :  { %2720 = vmatmul.msk.bf16.gmra.mxu0 %vm2022_vm11, %v1947_v37 }
 0x2a3   :  { %1168 = vrot.lane.b32.xlu2 %v1105_v22, %s2892_s22  ;;  %1074 = vrot.lane.b32.xlu1 %v2798_v49, %s2889_s27  ;;  %v1717_v49 = vsel %vm1673_vm6, %v1652_v56, %v4618_v5  ;;  %v1601_v5 = vsel %vm1543_vm4, %v1536_v58, %v4647_v4  ;;  %v5266_v58 = vld [vmem:[#allocation58_spill] sm:$0xff] }
 0x2a4   :  { %1000 = vrot.lane.b32.xlu0 %v4640_v45, %s2888_s19  ;;  %v1782_v45 = vsel %vm1738_vm7, %v1717_v49, %v4635_v7 }
 0x2a5   :  { %v1057_v24 = vpop.permute.xlu2 %1056  ;;  %v1847_v39 = vsel %vm1803_vm8, %v1782_v45, %v1293_v12 }
 0x2a6   :  { %v1387_v20 = vpop.permute.xlu1 %1386  ;;  %v1069_v0 = vpop.permute.xlu0 %1068 }
 0x2a7   :  { %v1912_v57 = vsel %vm1868_vm9, %v1847_v39, %v1387_v20  ;;  %v1666_v7 = vsel %vm1608_vm5, %v1601_v5, %v1069_v0  ;;  %v4754_v22 = vpop.f32.mrf.mxu1 }
 0x2a8   :  { %v1731_v9 = vsel %vm1673_vm6, %v1666_v7, %v4669_v62 }
 0x2ab   :  { %1406 = vrot.lane.b32.xlu2 %v1343_v28, %s2894_s24  ;;  %1312 = vrot.lane.b32.xlu1 %v2799_v36, %s2890_s20 }
 0x2ac   :  { %1238 = vrot.lane.b32.xlu0 %v1175_v15, %s2891_s21 }
 0x2ad   :  { %v1265_v2 = vpop.permute.xlu2 %1264 }
 0x2ae   :  { %v1233_v1 = vpop.permute.xlu1 %1232  ;;  %v1457_v16 = vpop.permute.xlu0 %1456 }
 0x2af   :  { %v1977_v53 = vsel %vm1933_vm10, %v1912_v57, %v1457_v16  ;;  %v1796_v29 = vsel %vm1738_vm7, %v1731_v9, %v1233_v1  ;;  %v4761_v19 = vpop.f32.mrf.mxu1 }
 0x2b0   :  { %2735 = vmatmul.msk.bf16.gmra.mxu2 %vm2022_vm11, %v1977_v53  ;;  %v1861_v55 = vsel %vm1803_vm8, %v1796_v29, %v1307_v34  ;;  %v1494_v34 = vsel %vm1478_vm3, %v4281_v46, %v5263_v41 }
 0x2b1   :  { %v1559_v23 = vsel %vm1543_vm4, %v1494_v34, %v5264_v6 }
 0x2b2   :  { %v1624_v36 = vsel %vm1608_vm5, %v1559_v23, %v1027_v30 }
 0x2b4   :  { %1476 = vrot.lane.b32.xlu0 %v1413_v38, %s2893_s23 }
 0x2b5   :  { %v997_v42 = vpop.permute.xlu2 %996 }
 0x2b6   :  { %v1471_v4 = vpop.permute.xlu1 %1470  ;;  %v1401_v40 = vpop.permute.xlu0 %1400 }
 0x2b7   :  { %v1926_v10 = vsel %vm1868_vm9, %v1861_v55, %v1401_v40  ;;  %v4772_v20 = vpop.f32.mrf.mxu1 }
 0x2b8   :  { %v1991_v44 = vsel %vm1933_vm10, %v1926_v10, %v1471_v4 }
 0x2b9   :  { %2742 = vmatmul.msk.bf16.gmra.mxu3 %vm2022_vm11, %v1991_v44 }
 0x2bd   :  { %v1071_v15 = vpop.permute.xlu2 %1070 }
 0x2be   :  { %v1121_v62 = vpop.permute.xlu1 %1120  ;;  %v983_v50 = vpop.permute.xlu0 %982 }
 0x2bf   :  { %v1689_v12 = vsel %vm1673_vm6, %v1624_v36, %v1121_v62  ;;  %v1589_v30 = vsel %vm1543_vm4, %v1524_v60, %v983_v50  ;;  %v4782_v32 = vpop.f32.mrf.mxu1 }
 0x2c0   :  { %v1654_v0 = vsel %vm1608_vm5, %v1589_v30, %v1057_v24  ;;  %v1538_v24 = vsel %vm1478_vm3, %v4344_v48, %v5266_v58 }
 0x2c1   :  { %v1603_v39 = vsel %vm1543_vm4, %v1538_v24, %v997_v42 }
 0x2c2   :  { %v1668_v43 = vsel %vm1608_vm5, %v1603_v39, %v1071_v15  ;;  %v4834_v39 = vpop.f32.mrf.mxu3 }
 0x2c5   :  { %v1459_v26 = vpop.permute.xlu2 %1458 }
 0x2c6   :  { %v1151_v54 = vpop.permute.xlu1 %1150  ;;  %v1191_v52 = vpop.permute.xlu0 %1190 }
 0x2c7   :  { %v1754_v37 = vsel %vm1738_vm7, %v1689_v12, %v1191_v52  ;;  %v1719_v28 = vsel %vm1673_vm6, %v1654_v0, %v1151_v54  ;;  %v4792_v7 = vpop.f32.mrf.mxu1  ;;  %v5268_v12 = vld [vmem:[#allocation37_spill] sm:$0xff] }
 0x2c8   :  { %v1819_v11 = vsel %vm1803_vm8, %v1754_v37, %v1265_v2  ;;  %v5267_v2 = vld [vmem:[#allocation51_spill] sm:$0xff]  ;;  %v1540_v37 = vsel %vm1478_vm3, %v4507_v61, %v5268_v12 }
 0x2c9   :  { %v1496_v55 = vsel %vm1478_vm3, %v4447_v33, %v5267_v2 }
 0x2cd   :  { %v1403_v17 = vpop.permute.xlu2 %1402 }
 0x2ce   :  { %v1359_v27 = vpop.permute.xlu1 %1358  ;;  %v1221_v8 = vpop.permute.xlu0 %1220 }
 0x2cf   :  { %v1884_v47 = vsel %vm1868_vm9, %v1819_v11, %v1359_v27  ;;  %v1784_v51 = vsel %vm1738_vm7, %v1719_v28, %v1221_v8  ;;  %v4801_v40 = vpop.f32.mrf.mxu1 }
 0x2d5   :  { %v1029_v5 = vpop.permute.xlu2 %1028 }
 0x2d6   :  { %v1429_v35 = vpop.permute.xlu1 %1428  ;;  %v1295_v46 = vpop.permute.xlu0 %1294 }
 0x2d7   :  { %v1949_v63 = vsel %vm1933_vm10, %v1884_v47, %v1429_v35  ;;  %v1849_v56 = vsel %vm1803_vm8, %v1784_v51, %v1295_v46  ;;  %v4806_v52 = vpop.f32.mrf.mxu1  ;;  %v2185_v35 = vpop.f32.mrf.mxu2 }
 0x2d8   :  { %2721 = vmatmul.msk.bf16.gmra.mxu0 %vm2022_vm11, %v1949_v63 }
 0x2dd   :  { %v1267_v4 = vpop.permute.xlu2 %1266 }
 0x2de   :  { %v1165_v25 = vpop.permute.xlu1 %1164  ;;  %v1389_v49 = vpop.permute.xlu0 %1388 }
 0x2df   :  { %v1914_v45 = vsel %vm1868_vm9, %v1849_v56, %v1389_v49  ;;  %v1733_v57 = vsel %vm1673_vm6, %v1668_v43, %v1165_v25  ;;  %v4813_v8 = vpop.f32.mrf.mxu1  ;;  %v2187_v51 = vpop.f32.mrf.mxu2  ;;  %v5269_v49 = vld [vmem:[#allocation34_spill] sm:$0xff] }
 0x2e0   :  { %v1979_v59 = vsel %vm1933_vm10, %v1914_v45, %v1459_v26  ;;  %v1542_v45 = vsel %vm1478_vm3, %v4629_v13, %v5269_v49 }
 0x2e1   :  { %2736 = vmatmul.msk.bf16.gmra.mxu2 %vm2022_vm11, %v1979_v59 }
 0x2e5   :  { %v1431_v54 = vpop.permute.xlu2 %1430 }
 0x2e6   :  { %v1309_v1 = vpop.permute.xlu1 %1308  ;;  %v1235_v14 = vpop.permute.xlu0 %1234 }
 0x2e7   :  { %v1798_v16 = vsel %vm1738_vm7, %v1733_v57, %v1235_v14  ;;  %v4821_v63 = vpop.f32.mrf.mxu1 }
 0x2e8   :  { %v1863_v53 = vsel %vm1803_vm8, %v1798_v16, %v1309_v1  ;;  %v2190_v1 = vpop.f32.mrf.mxu2 }
 0x2e9   :  { %v1928_v9 = vsel %vm1868_vm9, %v1863_v53, %v1403_v17 }
 0x2ed   :  { %v1237_v23 = vpop.permute.xlu2 %1236 }
 0x2ee   :  { %v955_v38 = vpop.permute.xlu1 %954  ;;  %v1473_v29 = vpop.permute.xlu0 %1472 }
 0x2ef   :  { %v1993_v48 = vsel %vm1933_vm10, %v1928_v9, %v1473_v29  ;;  %v1561_v10 = vsel %vm1543_vm4, %v1496_v55, %v955_v38  ;;  %v4831_v59 = vpop.f32.mrf.mxu1  ;;  %v4842_v9 = vpop.f32.mrf.mxu3  ;;  %v2803_v55 = vld [vmem:[%s5062_s3 + $0x8] sm:$0xff] }
 0x2f0   :  { %2743 = vmatmul.msk.bf16.gmra.mxu3 %vm2022_vm11, %v1993_v48  ;;  %v1626_v50 = vsel %vm1608_vm5, %v1561_v10, %v1029_v5  ;;  %v2192_v29 = vpop.f32.mrf.mxu2  ;;  %2500 = vmatpush.bf16.msrb.mxu1 %v2803_v55 }
 0x2f5   :  { %v1475_v0 = vpop.permute.xlu2 %1474 }
 0x2f6   :  { %v1193_v44 = vpop.permute.xlu1 %1192  ;;  %v1123_v62 = vpop.permute.xlu0 %1122 }
 0x2f7   :  { %v1691_v42 = vsel %vm1673_vm6, %v1626_v50, %v1123_v62  ;;  %v4838_v57 = vpop.f32.mrf.mxu1  ;;  %v4854_v62 = vpop.f32.mrf.mxu0 }
 0x2f8   :  { %v1756_v15 = vsel %vm1738_vm7, %v1691_v42, %v1193_v44  ;;  %v4852_v44 = vpop.f32.mrf.mxu3  ;;  %v2195_v50 = vpop.f32.mrf.mxu2 }
 0x2f9   :  { %v1821_v34 = vsel %vm1803_vm8, %v1756_v15, %v1267_v4 }
 0x2fd   :  { %v1169_v24 = vpop.permute.xlu2 %1168 }
 0x2fe   :  { %v999_v41 = vpop.permute.xlu1 %998  ;;  %v1361_v27 = vpop.permute.xlu0 %1360 }
 0x2ff   :  { %v1886_v33 = vsel %vm1868_vm9, %v1821_v34, %v1361_v27  ;;  %v1605_v11 = vsel %vm1543_vm4, %v1540_v37, %v999_v41  ;;  %v4850_v10 = vpop.f32.mrf.mxu1 }
 0x300   :  { %v1951_v6 = vsel %vm1933_vm10, %v1886_v33, %v1431_v54  ;;  %v4856_v54 = vpop.f32.mrf.mxu0  ;;  %v4858_v15 = vpop.f32.mrf.mxu3  ;;  %v4865_v33 = vld [vmem:[%s5061_s2] ss:$0 sm:$0xff] }
 0x301   :  { %2722 = vmatmul.msk.bf16.gmra.mxu0 %vm2022_vm11, %v1951_v6  ;;  %v2197_v41 = vpop.f32.mrf.mxu2 }
 0x305   :  { %v1407_v38 = vpop.permute.xlu2 %1406 }
 0x306   :  { %v1167_v36 = vpop.permute.xlu1 %1166  ;;  %v1073_v26 = vpop.permute.xlu0 %1072 }
 0x307   :  { %v1670_v47 = vsel %vm1608_vm5, %v1605_v11, %v1073_v26  ;;  %v2186_v26 = vadd.f32 %v4865_v33, %v2185_v35 }
 0x308   :  { %v1735_v46 = vsel %vm1673_vm6, %v1670_v47, %v1167_v36  ;;  %v4860_v27 = vpop.f32.mrf.mxu3 }
 0x309   :  { %v1800_v60 = vsel %vm1738_vm7, %v1735_v46, %v1237_v23  ;;  %v4868_v23 = vpop.f32.mrf.mxu0  ;;  %v2200_v36 = vpop.f32.mrf.mxu2 }
 0x30e   :  { %v1405_v3 = vpop.permute.xlu1 %1404  ;;  %v1311_v30 = vpop.permute.xlu0 %1310 }
 0x30f   :  { %v1865_v28 = vsel %vm1803_vm8, %v1800_v60, %v1311_v30  ;;  %v2188_v60 = vadd.f32 %v4865_v33, %v2187_v51 }
 0x310   :  { %v1930_v17 = vsel %vm1868_vm9, %v1865_v28, %v1405_v3  ;;  %v2294_v3 = vmax.f32 %v2186_v26, 0.0  ;;  %v4876_v30 = vpop.f32.mrf.mxu3 }
 0x311   :  { %v1995_v61 = vsel %vm1933_vm10, %v1930_v17, %v1475_v0  ;;  %v4873_v46 = vpop.f32.mrf.mxu0  ;;  %v2202_v28 = vpop.f32.mrf.mxu2 }
 0x312   :  { %2744 = vmatmul.msk.bf16.gmra.mxu3 %vm2022_vm11, %v1995_v61  ;;  %v2396_v61 = vsel %vm1933_vm10, %v2294_v3, 0.0  ;;  %v2203_v26 = vadd.f32 %v4865_v33, %v2202_v28 }
 0x316   :  { %v1001_v25 = vpop.permute.xlu0 %1000  ;;  %v1075_v56 = vpop.permute.xlu1 %1074 }
 0x317   :  { %v1607_v58 = vsel %vm1543_vm4, %v1542_v45, %v1001_v25  ;;  %v2180_v42 = vpop.f32.mrf.mxu1  ;;  %v2295_v25 = vmax.f32 %v2188_v60, 0.0 }
 0x318   :  { %v1672_v43 = vsel %vm1608_vm5, %v1607_v58, %v1075_v56  ;;  %v2181_v12 = vadd.f32 %v4865_v33, %v2180_v42  ;;  %v2191_v56 = vadd.f32 %v4865_v33, %v2190_v1  ;;  %v2193_v58 = vadd.f32 %v4865_v33, %v2192_v29 }
 0x319   :  { %v1737_v5 = vsel %vm1673_vm6, %v1672_v43, %v1169_v24  ;;  %v2398_v49 = vsel %vm1933_vm10, %v2295_v25, 0.0  ;;  %v4883_v24 = vpop.f32.mrf.mxu3  ;;  %v4885_v51 = vpop.f32.mrf.mxu0 }
 0x31a   :  { %v2292_v11 = vmax.f32 %v2181_v12, 0.0  ;;  %v2296_v45 = vmax.f32 %v2191_v56, 0.0 }
 0x31c   :  { %v2393_v0 = vsel %vm1933_vm10, %v2292_v11, 0.0 }
 0x31e   :  { %v1239_v14 = vpop.permute.xlu0 %1238  ;;  %v1313_v53 = vpop.permute.xlu1 %1312 }
 0x31f   :  { %v1802_v16 = vsel %vm1738_vm7, %v1737_v5, %v1239_v14  ;;  %v2182_v34 = vpop.f32.mrf.mxu1  ;;  %v2400_v5 = vsel %vm1933_vm10, %v2296_v45, 0.0 }
 0x320   :  { %v1867_v13 = vsel %vm1803_vm8, %v1802_v16, %v1313_v53  ;;  %v2183_v6 = vadd.f32 %v4865_v33, %v2182_v34  ;;  %v2297_v16 = vmax.f32 %v2193_v58, 0.0  ;;  %v2196_v53 = vadd.f32 %v4865_v33, %v2195_v50 }
 0x321   :  { %v1932_v48 = vsel %vm1868_vm9, %v1867_v13, %v1407_v38 }
 0x322   :  { %v2293_v37 = vmax.f32 %v2183_v6, 0.0  ;;  %v2402_v1 = vsel %vm1933_vm10, %v2297_v16, 0.0  ;;  %v2298_v38 = vmax.f32 %v2196_v53, 0.0  ;;  %v2201_v6 = vadd.f32 %v4865_v33, %v2200_v36 }
 0x324   :  { %v2394_v47 = vsel %vm1933_vm10, %v2293_v37, 0.0  ;;  %v2404_v42 = vsel %vm1933_vm10, %v2298_v38, 0.0  ;;  %v2300_v37 = vmax.f32 %v2201_v6, 0.0 }
 0x325   :  { %v2395_v17 = vadd.f32 %v2394_v47, %v2393_v0 }
 0x326   :  { %v1477_v4 = vpop.permute.xlu0 %1476 }
 0x327   :  { %v1997_v2 = vsel %vm1933_vm10, %v1932_v48, %v1477_v4  ;;  %v2397_v35 = vadd.f32 %v2396_v61, %v2395_v17  ;;  %v2198_v48 = vadd.f32 %v4865_v33, %v2197_v41  ;;  %v4891_v4 = vpop.f32.mrf.mxu0  ;;  %v2408_v17 = vsel %vm1933_vm10, %v2300_v37, 0.0 }
 0x328   :  { %2745 = vmatmul.msk.bf16.gmra.mxu3 %vm2022_vm11, %v1997_v2  ;;  %v4893_v2 = vpop.f32.mrf.mxu3  ;;  %v2301_v61 = vmax.f32 %v2203_v26, 0.0  ;;  %v2123_v37 = vadd.f32 %v4865_v33, %v4868_v23  ;;  %v2228_v23 = vadd.f32 %v4865_v33, %v4876_v30  ;;  %v2131_v30 = vadd.f32 %v4865_v33, %v4891_v4 }
 0x329   :  { %v2399_v43 = vadd.f32 %v2398_v49, %v2397_v35  ;;  %v2299_v34 = vmax.f32 %v2198_v48, 0.0 }
 0x32a   :  { %v2410_v49 = vsel %vm1933_vm10, %v2301_v61, 0.0 }
 0x32b   :  { %v2401_v13 = vadd.f32 %v2400_v5, %v2399_v43  ;;  %v2406_v50 = vsel %vm1933_vm10, %v2299_v34, 0.0  ;;  %v2216_v43 = vadd.f32 %v4865_v33, %v4834_v39  ;;  %v2218_v5 = vadd.f32 %v4865_v33, %v4842_v9 }
 0x32c   :  { %v2221_v39 = vadd.f32 %v4865_v33, %v4852_v44  ;;  %v2121_v9 = vadd.f32 %v4865_v33, %v4856_v54  ;;  %v2226_v44 = vadd.f32 %v4865_v33, %v4860_v27  ;;  %v2128_v27 = vadd.f32 %v4865_v33, %v4885_v51 }
 0x32d   :  { %v2403_v29 = vadd.f32 %v2402_v1, %v2401_v13  ;;  %v2118_v1 = vadd.f32 %v4865_v33, %v4854_v62  ;;  %v2307_v6 = vmax.f32 %v2218_v5, 0.0 }
 0x32e   :  { %v2268_v54 = vmax.f32 %v2121_v9, 0.0  ;;  %v2272_v9 = vmax.f32 %v2131_v30, 0.0 }
 0x32f   :  { %v2405_v12 = vadd.f32 %v2404_v42, %v2403_v29  ;;  %v2132_v60 = vpop.f32.mrf.mxu0  ;;  %v2306_v42 = vmax.f32 %v2216_v43, 0.0 }
 0x330   :  { %v4900_v47 = vpop.f32.mrf.mxu3 }
 0x331   :  { %v2407_v41 = vadd.f32 %v2406_v50, %v2405_v12  ;;  %v2223_v12 = vadd.f32 %v4865_v33, %v4858_v15  ;;  %v2267_v50 = vmax.f32 %v2118_v1, 0.0  ;;  %v2422_v15 = vsel %vm1933_vm10, %v2307_v6, 0.0 }
 0x332   :  { %v2271_v1 = vmax.f32 %v2128_v27, 0.0 }
 0x333   :  { %v2205_v14 = vpop.f32.mrf.mxu2  ;;  %v2409_v56 = vadd.f32 %v2408_v17, %v2407_v41  ;;  %v2309_v17 = vmax.f32 %v2223_v12, 0.0 }
 0x334   :  { %v2206_v11 = vadd.f32 %v4865_v33, %v2205_v14  ;;  %v2345_v12 = vsel %vm1933_vm10, %v2271_v1, 0.0  ;;  %v2153_v1 = vadd.f32 %v4865_v33, %v4761_v19 }
 0x335   :  { %v2411_v58 = vadd.f32 %v2410_v49, %v2409_v56  ;;  %v2310_v49 = vmax.f32 %v2226_v44, 0.0  ;;  %v2347_v44 = vsel %vm1933_vm10, %v2272_v9, 0.0 }
 0x336   :  { %v2302_v25 = vmax.f32 %v2206_v11, 0.0  ;;  %v2308_v11 = vmax.f32 %v2221_v39, 0.0  ;;  %v2281_v9 = vmax.f32 %v2153_v1, 0.0 }
 0x338   :  { %v2412_v28 = vsel %vm1933_vm10, %v2302_v25, 0.0  ;;  %v4914_v38 = vpop.f32.mrf.mxu3  ;;  %v2337_v25 = vsel %vm1933_vm10, %v2267_v50, 0.0 }
 0x339   :  { %v2413_v16 = vadd.f32 %v2412_v28, %v2411_v58  ;;  %v2231_v58 = vadd.f32 %v4865_v33, %v4883_v24  ;;  %v2338_v51 = vadd.f32 %v2337_v25, %v4537_v18 }
 0x33b   :  { %v2207_v55 = vpop.f32.mrf.mxu2  ;;  %v2312_v24 = vmax.f32 %v2231_v58, 0.0 }
 0x33c   :  { %v2208_v3 = vadd.f32 %v4865_v33, %v2207_v55 }
 0x33e   :  { %v2303_v35 = vmax.f32 %v2208_v3, 0.0  ;;  %v2420_v3 = vsel %vm1933_vm10, %v2306_v42, 0.0 }
 0x340   :  { %v2414_v14 = vsel %vm1933_vm10, %v2303_v35, 0.0  ;;  %v4938_v56 = vpop.f32.mrf.mxu3  ;;  %v2424_v35 = vsel %vm1933_vm10, %v2308_v11, 0.0  ;;  %v2432_v11 = vsel %vm1933_vm10, %v2312_v24, 0.0 }
 0x341   :  { %v2415_v55 = vadd.f32 %v2414_v14, %v2413_v16  ;;  %v2426_v14 = vsel %vm1933_vm10, %v2309_v17, 0.0  ;;  %v2311_v16 = vmax.f32 %v2228_v23, 0.0 }
 0x343   :  { %v2430_v18 = vsel %vm1933_vm10, %v2311_v16, 0.0 }
 0x355   :  { %v2135_v53 = vpop.f32.mrf.mxu0 }
 0x356   :  { %v2136_v4 = vadd.f32 %v4865_v33, %v2135_v53 }
 0x35d   :  { %v2137_v28 = vpop.f32.mrf.mxu0 }
 0x35e   :  { %v2138_v50 = vadd.f32 %v4865_v33, %v2137_v28 }
 0x364   :  { %v2210_v0 = vpop.f32.mrf.mxu2 }
 0x365   :  { %v2211_v36 = vadd.f32 %v4865_v33, %v2210_v0  ;;  %v2126_v0 = vadd.f32 %v4865_v33, %v4873_v46 }
 0x367   :  { %v2304_v45 = vmax.f32 %v2211_v36, 0.0  ;;  %v2269_v36 = vmax.f32 %v2123_v37, 0.0  ;;  %v2270_v43 = vmax.f32 %v2126_v0, 0.0 }
 0x369   :  { %v2416_v48 = vsel %vm1933_vm10, %v2304_v45, 0.0  ;;  %v2339_v45 = vsel %vm1933_vm10, %v2268_v54, 0.0  ;;  %v2343_v42 = vsel %vm1933_vm10, %v2270_v43, 0.0 }
 0x36a   :  { %v2417_v62 = vadd.f32 %v2416_v48, %v2415_v55  ;;  %v2133_v48 = vadd.f32 %v4865_v33, %v2132_v60  ;;  %v2340_v39 = vadd.f32 %v2339_v45, %v2338_v51  ;;  %v2148_v45 = vadd.f32 %v4865_v33, %v4752_v31 }
 0x36c   :  { %v2212_v13 = vpop.f32.mrf.mxu2 }
 0x36d   :  { %v2213_v29 = vadd.f32 %v4865_v33, %v2212_v13  ;;  %v2341_v13 = vsel %vm1933_vm10, %v2269_v36, 0.0 }
 0x36f   :  { %v2305_v34 = vmax.f32 %v2213_v29, 0.0  ;;  %v2428_v29 = vsel %vm1933_vm10, %v2310_v49, 0.0 }
 0x371   :  { %v2418_v26 = vsel %vm1933_vm10, %v2305_v34, 0.0  ;;  %v2342_v34 = vadd.f32 %v2341_v13, %v2340_v39  ;;  %v2279_v13 = vmax.f32 %v2148_v45, 0.0 }
 0x372   :  { %v2419_v41 = vadd.f32 %v2418_v26, %v2417_v62  ;;  %v2273_v62 = vmax.f32 %v2133_v48, 0.0 }
 0x373   :  { %v2344_v60 = vadd.f32 %v2343_v42, %v2342_v34  ;;  %v2361_v42 = vsel %vm1933_vm10, %v2279_v13, 0.0 }
 0x374   :  { %v2421_v61 = vadd.f32 %v2420_v3, %v2419_v41  ;;  %v4958_v41 = vpop.f32.mrf.mxu3  ;;  %v2274_v3 = vmax.f32 %v2136_v4, 0.0  ;;  %v2349_v17 = vsel %vm1933_vm10, %v2273_v62, 0.0  ;;  %v2233_v4 = vadd.f32 %v4865_v33, %v4893_v2 }
 0x375   :  { %v2346_v54 = vadd.f32 %v2345_v12, %v2344_v60  ;;  %v2163_v60 = vadd.f32 %v4865_v33, %v4801_v40 }
 0x376   :  { %v2423_v46 = vadd.f32 %v2422_v15, %v2421_v61  ;;  %v2802_v15 = vld [vmem:[%s5062_s3] sm:$0xff]  ;;  %v2275_v61 = vmax.f32 %v2138_v50, 0.0  ;;  %v2351_v23 = vsel %vm1933_vm10, %v2274_v3, 0.0 }
 0x377   :  { %v2348_v25 = vadd.f32 %v2347_v44, %v2346_v54  ;;  %2501 = vmatpush.bf16.msrb.mxu1 %v2802_v15  ;;  %v2166_v44 = vadd.f32 %v4865_v33, %v4806_v52  ;;  %v2168_v54 = vadd.f32 %v4865_v33, %v4813_v8  ;;  %v2171_v52 = vadd.f32 %v4865_v33, %v4821_v63 }
 0x378   :  { %v2425_v5 = vadd.f32 %v2424_v35, %v2423_v46  ;;  %v2146_v35 = vadd.f32 %v4865_v33, %v4744_v21  ;;  %v2353_v49 = vsel %vm1933_vm10, %v2275_v61, 0.0  ;;  %v2173_v8 = vadd.f32 %v4865_v33, %v4831_v59 }
 0x379   :  { %v2350_v27 = vadd.f32 %v2349_v17, %v2348_v25  ;;  %v2286_v25 = vmax.f32 %v2166_v44, 0.0  ;;  %v2176_v63 = vadd.f32 %v4865_v33, %v4838_v57  ;;  %v2178_v59 = vadd.f32 %v4865_v33, %v4850_v10 }
 0x37a   :  { %v2427_v55 = vadd.f32 %v2426_v14, %v2425_v5  ;;  %v2278_v51 = vmax.f32 %v2146_v35, 0.0  ;;  %v2151_v5 = vadd.f32 %v4865_v33, %v4754_v22  ;;  %v2158_v22 = vadd.f32 %v4865_v33, %v4782_v32 }
 0x37b   :  { %v2352_v28 = vadd.f32 %v2351_v23, %v2350_v27  ;;  %v2236_v32 = vadd.f32 %v4865_v33, %v4900_v47  ;;  %v2238_v47 = vadd.f32 %v4865_v33, %v4914_v38  ;;  %v2241_v38 = vadd.f32 %v4865_v33, %v4938_v56 }
 0x37c   :  { %v2429_v6 = vadd.f32 %v2428_v29, %v2427_v55  ;;  %v4971_v58 = vpop.f32.mrf.mxu3  ;;  %v2359_v29 = vsel %vm1933_vm10, %v2278_v51, 0.0  ;;  %v2280_v39 = vmax.f32 %v2151_v5, 0.0  ;;  %v2156_v55 = vadd.f32 %v4865_v33, %v4772_v20 }
 0x37d   :  { %v2354_v14 = vadd.f32 %v2353_v49, %v2352_v28  ;;  %v2365_v20 = vsel %vm1933_vm10, %v2281_v9, 0.0  ;;  %v2283_v50 = vmax.f32 %v2158_v22, 0.0  ;;  %v2314_v15 = vmax.f32 %v2236_v32, 0.0 }
 0x37e   :  { %v2431_v37 = vadd.f32 %v2430_v18, %v2429_v6  ;;  %v2140_v26 = vpop.f32.mrf.mxu0  ;;  %v2363_v34 = vsel %vm1933_vm10, %v2280_v39, 0.0  ;;  %v2282_v6 = vmax.f32 %v2156_v55, 0.0  ;;  %v2161_v18 = vadd.f32 %v4865_v33, %v4792_v7 }
 0x37f   :  { %v2141_v53 = vadd.f32 %v4865_v33, %v2140_v26  ;;  %v2369_v3 = vsel %vm1933_vm10, %v2283_v50, 0.0  ;;  %v2287_v49 = vmax.f32 %v2168_v54, 0.0  ;;  %v2436_v28 = vsel %vm1933_vm10, %v2314_v15, 0.0 }
 0x380   :  { %v2433_v0 = vadd.f32 %v2432_v11, %v2431_v37  ;;  %v2313_v37 = vmax.f32 %v2233_v4, 0.0  ;;  %v2367_v26 = vsel %vm1933_vm10, %v2282_v6, 0.0  ;;  %v2284_v11 = vmax.f32 %v2161_v18, 0.0 }
 0x381   :  { %v2276_v36 = vmax.f32 %v2141_v53, 0.0  ;;  %v2285_v53 = vmax.f32 %v2163_v60, 0.0  ;;  %v2377_v51 = vsel %vm1933_vm10, %v2287_v49, 0.0  ;;  %v2289_v5 = vmax.f32 %v2173_v8, 0.0 }
 0x382   :  { %v2434_v40 = vsel %vm1933_vm10, %v2313_v37, 0.0  ;;  %v2371_v61 = vsel %vm1933_vm10, %v2284_v11, 0.0  ;;  %v2291_v39 = vmax.f32 %v2178_v59, 0.0  ;;  %v2246_v10 = vadd.f32 %v4865_v33, %v4971_v58 }
 0x383   :  { %v2355_v43 = vsel %vm1933_vm10, %v2276_v36, 0.0  ;;  %v2435_v23 = vadd.f32 %v2434_v40, %v2433_v0  ;;  %v2373_v35 = vsel %vm1933_vm10, %v2285_v53, 0.0  ;;  %v2804_v40 = vld [vmem:[%s5064_s5] sm:$0xff] }
 0x384   :  { %v2356_v21 = vadd.f32 %v2355_v43, %v2354_v14  ;;  %v2247_v12 = vpop.f32.mrf.mxu3  ;;  %v2375_v43 = vsel %vm1933_vm10, %v2286_v25, 0.0  ;;  %v2318_v6 = vmax.f32 %v2246_v10, 0.0 }
 0x385   :  { %v2437_v0 = vadd.f32 %v2436_v28, %v2435_v23  ;;  %v2248_v18 = vadd.f32 %v4865_v33, %v2247_v12  ;;  %v2805_v12 = vld [vmem:[%s5064_s5 + $0x8] sm:$0xff] }
 0x386   :  { %v2142_v46 = vpop.f32.mrf.mxu0  ;;  %v2444_v58 = vsel %vm1933_vm10, %v2318_v6, 0.0  ;;  %2538 = vmatpush.bf16.msrb.mxu2 %v2805_v12 }
 0x387   :  { %v2143_v30 = vadd.f32 %v4865_v33, %v2142_v46  ;;  %v2315_v46 = vmax.f32 %v2238_v47, 0.0  ;;  %v2319_v32 = vmax.f32 %v2248_v18, 0.0 }
 0x389   :  { %v2277_v16 = vmax.f32 %v2143_v30, 0.0  ;;  %v2288_v30 = vmax.f32 %v2171_v52, 0.0  ;;  %v2438_v56 = vsel %vm1933_vm10, %v2315_v46, 0.0 }
 0x38a   :  { %2539 = vmatpush.bf16.msrb.mxu2 %v2804_v40 }
 0x38b   :  { %v2357_v48 = vsel %vm1933_vm10, %v2277_v16, 0.0  ;;  %v2243_v16 = vadd.f32 %v4865_v33, %v4958_v41  ;;  %v2379_v1 = vsel %vm1933_vm10, %v2288_v30, 0.0 }
 0x38c   :  { %v2358_v31 = vadd.f32 %v2357_v48, %v2356_v21  ;;  %v2316_v21 = vmax.f32 %v2241_v38, 0.0  ;;  %v2290_v48 = vmax.f32 %v2176_v63, 0.0 }
 0x38d   :  { %v2317_v55 = vmax.f32 %v2243_v16, 0.0 }
 0x38e   :  { %v2360_v24 = vadd.f32 %v2359_v29, %v2358_v31  ;;  %v2439_v31 = vadd.f32 %v2438_v56, %v2437_v0  ;;  %v2381_v29 = vsel %vm1933_vm10, %v2289_v5, 0.0  ;;  %v2383_v9 = vsel %vm1933_vm10, %v2290_v48, 0.0 }
 0x390   :  { %v2362_v19 = vadd.f32 %v2361_v42, %v2360_v24  ;;  %v2440_v42 = vsel %vm1933_vm10, %v2316_v21, 0.0 }
 0x391   :  { %v2441_v22 = vadd.f32 %v2440_v42, %v2439_v31 }
 0x392   :  { %v2364_v62 = vadd.f32 %v2363_v34, %v2362_v19  ;;  %v2385_v19 = vsel %vm1933_vm10, %v2291_v39, 0.0  ;;  %v2442_v34 = vsel %vm1933_vm10, %v2317_v55, 0.0  ;;  %v2826_v39 = vld [vmem:[%s5065_s6] ss:$0 sm:$0xff] }
 0x393   :  { %v2443_v50 = vadd.f32 %v2442_v34, %v2441_v22 }
 0x394   :  { %v2366_v2 = vadd.f32 %v2365_v20, %v2364_v62 }
 0x395   :  { %v2250_v36 = vpop.f32.mrf.mxu3  ;;  %v2445_v11 = vadd.f32 %v2444_v58, %v2443_v50 }
 0x396   :  { %v2368_v7 = vadd.f32 %v2367_v26, %v2366_v2  ;;  %v2251_v62 = vadd.f32 %v4865_v33, %v2250_v36 }
 0x398   :  { %v2370_v17 = vadd.f32 %v2369_v3, %v2368_v7  ;;  %v2320_v2 = vmax.f32 %v2251_v62, 0.0  ;;  %v2446_v3 = vsel %vm1933_vm10, %v2319_v32, 0.0 }
 0x399   :  { %v2447_v15 = vadd.f32 %v2446_v3, %v2445_v11 }
 0x39a   :  { %v2372_v27 = vadd.f32 %v2371_v61, %v2370_v17  ;;  %v2448_v53 = vsel %vm1933_vm10, %v2320_v2, 0.0 }
 0x39b   :  { %v2449_v61 = vadd.f32 %v2448_v53, %v2447_v15 }
 0x39c   :  { %v2374_v45 = vadd.f32 %v2373_v35, %v2372_v27 }
 0x39d   :  { %v2252_v24 = vpop.f32.mrf.mxu3 }
 0x39e   :  { %v2376_v14 = vadd.f32 %v2375_v43, %v2374_v45  ;;  %v2253_v60 = vadd.f32 %v4865_v33, %v2252_v24 }
 0x3a0   :  { %v2378_v13 = vadd.f32 %v2377_v51, %v2376_v14  ;;  %v2321_v7 = vmax.f32 %v2253_v60, 0.0 }
 0x3a2   :  { %v2380_v57 = vadd.f32 %v2379_v1, %v2378_v13  ;;  %v2450_v17 = vsel %vm1933_vm10, %v2321_v7, 0.0  ;;  %v2825_v13 = vld [vmem:[%s5063_s4] ss:$0 sm:$0xff] }
 0x3a3   :  { %v2451_v36 = vadd.f32 %v2450_v17, %v2449_v61 }
 0x3a4   :  { %v2382_v41 = vadd.f32 %v2381_v29, %v2380_v57 }
 0x3a6   :  { %v2384_v4 = vadd.f32 %v2383_v9, %v2382_v41 }
 0x3a8   :  { %v2386_v20 = vadd.f32 %v2385_v19, %v2384_v4 }
 0x3aa   :  { %v2387_v44 = vrot.slane %v2386_v20, 4 }
 0x3ab   :  { %v2255_v37 = vpop.f32.mrf.mxu3 }
 0x3ac   :  { %v2256_v26 = vadd.f32 %v4865_v33, %v2255_v37  ;;  %v2388_v47 = vadd.f32 %v2387_v44, %v2386_v20 }
 0x3ae   :  { %v2322_v54 = vmax.f32 %v2256_v26, 0.0  ;;  %v2389_v27 = vrot.slane %v2388_v47, 2 }
 0x3b0   :  { %v2452_v52 = vsel %vm1933_vm10, %v2322_v54, 0.0  ;;  %v2390_v46 = vadd.f32 %v2389_v27, %v2388_v47 }
 0x3b1   :  { %v2453_v49 = vadd.f32 %v2452_v52, %v2451_v36 }
 0x3b2   :  { %v2391_v43 = vrot.slane %v2390_v46, 1 }
 0x3b3   :  { %v2257_v25 = vpop.f32.mrf.mxu3 }
 0x3b4   :  { %v2258_v23 = vadd.f32 %v4865_v33, %v2257_v25  ;;  %v2392_v0 = vadd.f32 %v2391_v43, %v2390_v46 }
 0x3b6   :  { %v2323_v35 = vmax.f32 %v2258_v23, 0.0  ;;  %v2462_v5 = vpack.c.bf16 %v2392_v0, %v2392_v0 }
 0x3b8   :  { %v2454_v8 = vsel %vm1933_vm10, %v2323_v35, 0.0  ;;  %v2474_v16 = vunpack.c.l.b16 %v2462_v5 }
 0x3b9   :  { %v2455_v28 = vadd.f32 %v2454_v8, %v2453_v49 }
 0x3bb   :  { %v2456_v38 = vrot.slane %v2455_v28, 4 }
 0x3bd   :  { %v2457_v45 = vadd.f32 %v2456_v38, %v2455_v28 }
 0x3bf   :  { %v2458_v30 = vrot.slane %v2457_v45, 2 }
 0x3c1   :  { %v2459_v63 = vadd.f32 %v2458_v30, %v2457_v45 }
 0x3c3   :  { %v2460_v14 = vrot.slane %v2459_v63, 1 }
 0x3c5   :  { %v2461_v51 = vadd.f32 %v2460_v14, %v2459_v63 }
 0x3c7   :  { %v2463_v59 = vpack.c.bf16 %v2461_v51, %v2461_v51 }
 0x3c9   :  { %v2475_v33 = vunpack.c.l.b16 %v2463_v59 }
 0x3cb   :  { %v2477_v56 = vsel %vm2476_vm12, %v2475_v33, %v2474_v16 }
 0x3cc   :  { %v2478_v21 = vpack.c.b16 %v2477_v56, %v2477_v56 }
 0x3ce   :  { %2754 = vmatmul.msk.bf16.vlgmr.msrb.gmra.mxu1 %vm1933_vm10, %v2478_v21 }
 0x44b   :  { %v2503_v1 = vpop.f32.mrf.mxu1 }
 0x44c   :  { %v2504_v48 = vadd.f32 %v2825_v13, %v2503_v1 }
 0x44e   :  { %v2507_v31 = vmax.f32 %v2504_v48, 0.0 }
 0x450   :  { %v2508_v57 = vpack.c.bf16 %v2507_v31, %v2507_v31 }
 0x452   :  { %2763 = vmatmul.msk.bf16.vlgmr.msrb.gmra.mxu2 %vm1933_vm10, %v2508_v57 }
 0x453   :  { %v2505_v29 = vpop.f32.mrf.mxu1 }
 0x4d5   :  { %v2541_v55 = vpop.f32.mrf.mxu2 }
 0x4d6   :  { %v2542_v24 = vadd.f32 %v2826_v39, %v2541_v55 }
 0x4d8   :  { %2545 = vst [vmem:[#allocation2] sm:$0x3] %v2542_v24 }
 0x4d9   :  { %2556 = dma.vmem_to_hbm [thread:$0]  %s2552_s11, 32, %s2554_s14, [#allocation3]  }
 0x4dd   :  { %v2543_v42 = vpop.f32.mrf.mxu2 }
 0x4de   :  { %2885 = dma.done.wait [#allocation3], 32  }
 0x4df   :  { %2886 = vsyncadd [#allocation3], 4294967264 }
 0x4e0   :  { %2561 = vsyncpa [#allocation3], 1 }

</bundles_post_ra>
